<compile_context>
chip_gen: v6e
topology: v6e:2x2x1
jax: 0.10.0
libtpu: 0.0.40
codegen_flags: <defaults>
</compile_context>

<pallas_src>
import functools

import jax
import jax.numpy as jnp
from jax.experimental import pallas as pl
from jax.experimental.pallas import tpu as pltpu


# ----------------------------------------------------------------------------
# Fused kernel: all conv+BN(+tanh^3) layers for one batch tile.
# ----------------------------------------------------------------------------
def _postnet_fused_kernel(
    x_ref, w0_hbm, wm_hbm, wl_hbm, sc_e_ref, sh_e_ref, sc_l_ref, sh_l_ref,
    o_ref,
    w0_v, wm_v, wl_v, buf_a, buf_b, dma_sem,
    *, T, K, pad, lpad, n_layers, b_tile):
    """Refs:
      x_ref:    (Bt, Tp, Cm)      layer-0 input (zero-padded time halo of lpad rows
                                  each side, channels padded to Cm), compute dtype
      w*_hbm:   HBM refs          stacked conv weights (first / middle / last)
      sc_e/sh_e:(L-1, 1, Ce)      folded BN scale/shift for all emb-output layers
      sc_l/sh_l:(1, Cm)           folded BN scale/shift for the final layer
      o_ref:    (Bt, T, Cm)       final conv output (f32)
      w*_v:     VMEM scratch      single resident copy of the weights
      buf_a/b:  (Bt, Tp, Ce)      ping-pong activation slabs (compute dtype)
    """
    Ce = buf_a.shape[-1]
    cdt = buf_a.dtype
    off = lpad - pad                       # first tap's row offset into the slab

    # Single-copy resident weights: start all three DMAs up front, wait lazily
    # right before first use (the big middle-layer copy overlaps layer-0 work).
    cp0 = pltpu.make_async_copy(w0_hbm, w0_v, dma_sem.at[0])
    cpm = pltpu.make_async_copy(wm_hbm, wm_v, dma_sem.at[1])
    cpl = pltpu.make_async_copy(wl_hbm, wl_v, dma_sem.at[2])
    cp0.start(); cpm.start(); cpl.start()

    # Zero the (sublane-aligned, lpad-row) time halos of both ping-pong slabs;
    # every layer rewrites only the interior [lpad, lpad+T), so the zeros
    # reproduce each layer's 'same' zero padding exactly.
    if lpad:
        zero = jnp.zeros((b_tile, lpad, Ce), cdt)
        buf_a[:, 0:lpad, :] = zero
        buf_a[:, lpad + T:, :] = zero
        buf_b[:, 0:lpad, :] = zero
        buf_b[:, lpad + T:, :] = zero

    def layer(src_ref, w_vals, scale, shift, n_tanh, out_dtype):
        cin = src_ref.shape[-1]
        # im2col: K shifted windows concatenated on lanes -> ONE lane-dense,
        # (K*cin)-deep MXU matmul with M = Bt*T rows.
        lhs = jnp.concatenate(
            [src_ref[:, off + k: off + k + T, :] for k in range(K)], axis=-1)
        lhs = lhs.reshape(b_tile * T, K * cin)
        y = jnp.dot(lhs, w_vals, preferred_element_type=jnp.float32)
        y = y * scale + shift                  # folded BatchNorm + conv bias (f32)
        y = y.astype(out_dtype)                # bf16 tanh epilogue on v6e/v7x
        for _ in range(n_tanh):                # 3 nested tanhs (module as written)
            y = jnp.tanh(y)
        return y.reshape(b_tile, T, -1)

    bufs = (buf_a, buf_b)

    # ---- layer 0: mel -> emb ----
    cp0.wait()
    buf_a[:, lpad:lpad + T, :] = layer(x_ref, w0_v[...], sc_e_ref[0], sh_e_ref[0],
                                       n_tanh=3, out_dtype=cdt)
    src = buf_a

    # ---- middle layers: emb -> emb ----
    cpm.wait()
    for l in range(1, n_layers - 1):
        y = layer(src, wm_v[l - 1], sc_e_ref[l], sh_e_ref[l], n_tanh=3, out_dtype=cdt)
        dst = bufs[l % 2]
        dst[:, lpad:lpad + T, :] = y
        src = dst

    # ---- final layer: emb -> mel, no activation, straight to the output tile ----
    cpl.wait()
    o_ref[...] = layer(src, wl_v[...], sc_l_ref[...], sh_l_ref[...],
                       n_tanh=0, out_dtype=o_ref.dtype)


# ----------------------------------------------------------------------------
# VMEM budgeting / batch-tile selection
# ----------------------------------------------------------------------------
def _vmem_capacity_bytes():
    try:
        info = pltpu.get_tpu_info()
        for name in ("vmem_capacity_bytes", "vmem_bytes", "vmem_size_bytes"):
            v = getattr(info, name, None)
            if v:
                return int(v)
    except Exception:
        pass
    return 64 << 20                       # conservative fallback: v7x per-TC VMEM


def _choose_batch_tile_and_vmem(B, T, Tp, K, L, Cm, Ce, itm):
    cap = _vmem_capacity_bytes()
    w_bytes = (K * Cm * Ce + (L - 2) * K * Ce * Ce + K * Ce * Cm) * itm  # single copy
    aff_bytes = 2 * 2 * ((L - 1) * Ce + Cm) * 4        # scale/shift (double-buffered)
    per_elem = (2 * Tp * Cm * itm      # double-buffered input tile
                + 2 * T * Cm * 4       # double-buffered f32 output tile
                + 2 * Tp * Ce * itm    # two ping-pong activation slabs
                + T * K * Ce * itm     # im2col lhs materialization (widest layer)
                + T * Ce * 4)          # f32 matmul result
    headroom = 8 << 20                 # compiler-internal scratch / spill slack
    budget = int(0.70 * cap) - w_bytes - aff_bytes - headroom
    b_tile = int(max(1, min(B, budget // max(per_elem, 1))))
    need = w_bytes + aff_bytes + b_tile * per_elem + headroom
    vmem_limit = int(min(max(int(need * 1.25), 32 << 20), int(0.85 * cap)))
    return b_tile, vmem_limit


# ----------------------------------------------------------------------------
# Wrapper
# ----------------------------------------------------------------------------
def postnet_forward(x_bct, packed):
    """x_bct: (B, n_mel, T) as in PyTorch.  Returns (B, n_mel, T) float32."""
    w0, wm, wl = packed["w_first"], packed["w_mid"], packed["w_last"]
    sc_e, sh_e = packed["scale_emb"], packed["shift_emb"]
    sc_l, sh_l = packed["scale_last"], packed["shift_last"]

    Ce = w0.shape[1]                   # padded emb channels
    Cm = wl.shape[1]                   # padded mel channels
    K = wl.shape[0] // Ce
    L = wm.shape[0] + 2
    assert K % 2 == 1 and w0.shape[0] == K * Cm
    pad = (K - 1) // 2
    lpad = ((pad + 7) // 8) * 8 if pad else 0     # sublane-aligned time halo

    B, n_mel, T = x_bct.shape
    cdt = w0.dtype
    itm = jnp.dtype(cdt).itemsize
    Tp = T + 2 * lpad

    b_tile, vmem_limit = _choose_batch_tile_and_vmem(B, T, Tp, K, L, Cm, Ce, itm)
    B_pad = -(-B // b_tile) * b_tile
    n_tiles = B_pad // b_tile

    # NCW -> NTC (channels on lanes); pad batch to a tile multiple, time by the
    # aligned halo, channels to Cm.  Zero-padded rows/cols feed zero weight rows,
    # so they contribute nothing.
    x = jnp.transpose(x_bct, (0, 2, 1))
    x = jnp.pad(x, ((0, B_pad - B), (lpad, lpad), (0, Cm - n_mel))).astype(cdt)

    kernel = functools.partial(_postnet_fused_kernel, T=T, K=K, pad=pad,
                               lpad=lpad, n_layers=L, b_tile=b_tile)

    out = pl.pallas_call(
        kernel,
        out_shape=jax.ShapeDtypeStruct((B_pad, T, Cm), jnp.float32),
        grid=(n_tiles,),
        in_specs=[
            pl.BlockSpec((b_tile, Tp, Cm), lambda b: (b, 0, 0)),   # per-tile input
            pl.BlockSpec(memory_space=pl.ANY),                     # w_first (HBM)
            pl.BlockSpec(memory_space=pl.ANY),                     # w_mid   (HBM)
            pl.BlockSpec(memory_space=pl.ANY),                     # w_last  (HBM)
            pl.BlockSpec((L - 1, 1, Ce), lambda b: (0, 0, 0)),     # BN scale (emb)
            pl.BlockSpec((L - 1, 1, Ce), lambda b: (0, 0, 0)),     # BN shift (emb)
            pl.BlockSpec((1, Cm), lambda b: (0, 0)),               # BN scale (last)
            pl.BlockSpec((1, Cm), lambda b: (0, 0)),               # BN shift (last)
        ],
        out_specs=pl.BlockSpec((b_tile, T, Cm), lambda b: (b, 0, 0)),
        scratch_shapes=[
            pltpu.VMEM((K * Cm, Ce), cdt),          # resident w_first
            pltpu.VMEM((L - 2, K * Ce, Ce), cdt),   # resident w_mid
            pltpu.VMEM((K * Ce, Cm), cdt),          # resident w_last
            pltpu.VMEM((b_tile, Tp, Ce), cdt),      # ping-pong slab A
            pltpu.VMEM((b_tile, Tp, Ce), cdt),      # ping-pong slab B
            pltpu.SemaphoreType.DMA((3,)),          # weight-copy semaphores
        ],
        compiler_params=pltpu.CompilerParams(
            dimension_semantics=("parallel",),
            vmem_limit_bytes=vmem_limit),
    )(x, w0, wm, wl, sc_e, sh_e, sc_l, sh_l)

    # Drop batch/lane padding, back to PyTorch's (B, n_mel, T).
    return jnp.transpose(out[:B, :, :n_mel], (0, 2, 1))


# ----------------------------------------------------------------------------
# Parameter construction / packing
# ----------------------------------------------------------------------------
def init_postnet_params(key, n_mel, emb, kernel_size, n_convolutions):
    """Deterministic synthetic parameters for each Conv1DNorm layer (eval mode)."""
    layers = []
    dims = [(n_mel, emb)] + [(emb, emb)] * (n_convolutions - 2) + [(emb, n_mel)]
    eps = 1e-5
    for (cin, cout) in dims:
        key, k1, k2, k3, k4, k5, k6 = jax.random.split(key, 7)
        w = jax.random.normal(k1, (kernel_size, cin, cout), jnp.float32) * 0.1
        bias = jax.random.normal(k2, (cout,), jnp.float32) * 0.1
        gamma = 1.0 + 0.1 * jax.random.normal(k3, (cout,), jnp.float32)
        beta = 0.1 * jax.random.normal(k4, (cout,), jnp.float32)
        run_mean = 0.1 * jax.random.normal(k5, (cout,), jnp.float32)
        run_var = jnp.abs(1.0 + 0.1 * jax.random.normal(k6, (cout,), jnp.float32))
        scale = gamma / jnp.sqrt(run_var + eps)               # fold BN (eval)
        shift = scale * (bias - run_mean) + beta              # + conv bias
        layers.append(dict(w=w, scale=scale, shift=shift))
    return layers


def pack_postnet_params(layers, *, compute_dtype=jnp.bfloat16):
    """Per-layer lane-dense packing: mel dims pad to Cm, emb dims to Ce (x128)."""
    L = len(layers)
    assert L >= 3, "Postnet packing assumes n_convolutions >= 3"
    K = layers[0]["w"].shape[0]
    assert K % 2 == 1, "kernel_size must be odd for 'same' padding semantics"
    n_mel, emb = layers[0]["w"].shape[1], layers[0]["w"].shape[2]
    assert layers[-1]["w"].shape[1:] == (emb, n_mel)
    Cm = -(-n_mel // 128) * 128
    Ce = -(-emb // 128) * 128

    def pad_w(w, cin_p, cout_p):
        k, cin, cout = w.shape
        out = jnp.zeros((k, cin_p, cout_p), jnp.float32).at[:, :cin, :cout].set(w)
        # (K, Cin, Cout) -> (K*Cin, Cout): rows ordered (tap, cin), matching the
        # in-kernel lane-concat of the K shifted activation windows.
        return out.reshape(k * cin_p, cout_p).astype(compute_dtype)

    def pad_c(v, cp):
        return jnp.zeros((cp,), jnp.float32).at[:v.shape[0]].set(v)

    w_first = pad_w(layers[0]["w"], Cm, Ce)
    w_mid = jnp.stack([pad_w(p["w"], Ce, Ce) for p in layers[1:-1]])
    w_last = pad_w(layers[-1]["w"], Ce, Cm)
    scale_emb = jnp.stack([pad_c(p["scale"], Ce) for p in layers[:-1]])[:, None, :]
    shift_emb = jnp.stack([pad_c(p["shift"], Ce) for p in layers[:-1]])[:, None, :]
    scale_last = pad_c(layers[-1]["scale"], Cm)[None, :]
    shift_last = pad_c(layers[-1]["shift"], Cm)[None, :]
    return dict(w_first=w_first, w_mid=w_mid, w_last=w_last,
                scale_emb=scale_emb, shift_emb=shift_emb,
                scale_last=scale_last, shift_last=shift_last)


# ----------------------------------------------------------------------------
# Pure-JAX reference (same math, no Pallas)
# ----------------------------------------------------------------------------
def postnet_reference(x_bct, layers, kernel_size):
    pad = (kernel_size - 1) // 2
    x = jnp.transpose(x_bct, (0, 2, 1))            # (B, T, C)
    n = len(layers)
    for i, p in enumerate(layers):
        w, scale, shift = p["w"], p["scale"], p["shift"]
        K = w.shape[0]
        T = x.shape[1]
        xp = jnp.pad(x, ((0, 0), (pad, pad), (0, 0)))
        y = sum(jnp.einsum("btc,cd->btd", xp[:, k:k + T, :], w[k]) for k in range(K))
        y = y * scale[None, None, :] + shift[None, None, :]
        if i != n - 1:
            y = jnp.tanh(jnp.tanh(jnp.tanh(y)))    # module applies 3 nested tanhs
        x = y
    return jnp.transpose(x, (0, 2, 1))


if __name__ == "__main__":
    # Small synthetic config consistent with the module.
    n_mel_channels = 16
    embedding_dim = 32
    kernel_size = 5
    n_convolutions = 5
    B, T = 2, 16

    key = jax.random.PRNGKey(0)
    key, kx = jax.random.split(key)
    x = jax.random.normal(kx, (B, n_mel_channels, T), jnp.float32)  # (B, C, T)

    layers = init_postnet_params(key, n_mel_channels, embedding_dim,
                                 kernel_size, n_convolutions)
    ref = postnet_reference(x, layers, kernel_size)

    fwd = jax.jit(postnet_forward)

    # f32 MXU operands: accuracy check against the f32 reference.
    packed_f32 = pack_postnet_params(layers, compute_dtype=jnp.float32)
    out_f32 = jax.block_until_ready(fwd(x, packed_f32))
    assert out_f32.shape == (B, n_mel_channels, T)
    assert jnp.allclose(out_f32, ref, atol=2e-4, rtol=2e-4), \
        "Pallas f32 output mismatch vs reference"

    # bf16 MXU operands (default, MXU-native on v5e/v6e/v7x): f32 accumulate and
    # BN scale/shift, bf16 tanh epilogue + inter-layer slabs (quantizes
    # activations vs the f32 reference, hence the looser tolerance).
    packed_bf16 = pack_postnet_params(layers)
    out_bf16 = jax.block_until_ready(fwd(x, packed_bf16))
    assert jnp.allclose(out_bf16, ref, atol=7e-2, rtol=7e-2), \
        "Pallas bf16 output mismatch vs reference"

    print("KERNEL_OK")
</pallas_src>

<mosaic_0001>
module attributes {stable_mosaic.version = 11 : i64} {
  func.func @_postnet_fused_kernel(%arg0: i32, %arg1: memref<2x32x128xf32, #tpu.memory_space<vmem>>, %arg2: memref<640x128xf32, #tpu.memory_space<any>>, %arg3: memref<3x640x128xf32, #tpu.memory_space<any>>, %arg4: memref<640x128xf32, #tpu.memory_space<any>>, %arg5: memref<4x1x128xf32, #tpu.memory_space<vmem>>, %arg6: memref<4x1x128xf32, #tpu.memory_space<vmem>>, %arg7: memref<1x128xf32, #tpu.memory_space<vmem>>, %arg8: memref<1x128xf32, #tpu.memory_space<vmem>>, %arg9: memref<2x16x128xf32, #tpu.memory_space<vmem>>, %arg10: memref<640x128xf32, #tpu.memory_space<vmem>>, %arg11: memref<3x640x128xf32, #tpu.memory_space<vmem>>, %arg12: memref<640x128xf32, #tpu.memory_space<vmem>>, %arg13: memref<2x32x128xf32, #tpu.memory_space<vmem>>, %arg14: memref<2x32x128xf32, #tpu.memory_space<vmem>>, %arg15: memref<3x!tpu.dma_semaphore, #tpu.memory_space<semaphore_mem>>) attributes {dimension_semantics = [#tpu.dimension_semantics<parallel>], iteration_bounds = array<i64: 1>, scalar_prefetch = 0 : i64, scratch_operands = 6 : i64, tpu.core_type = #tpu.core_type<tc>, window_params = [{transform_indices = @transform_0, window_bounds = array<i64: 2, 32, 128>}, {}, {}, {}, {pipeline_mode = #tpu.pipeline_mode<synchronous>, transform_indices = @transform_4, window_bounds = array<i64: 4, 1, 128>}, {pipeline_mode = #tpu.pipeline_mode<synchronous>, transform_indices = @transform_5, window_bounds = array<i64: 4, 1, 128>}, {pipeline_mode = #tpu.pipeline_mode<synchronous>, transform_indices = @transform_6, window_bounds = array<i64: 1, 128>}, {pipeline_mode = #tpu.pipeline_mode<synchronous>, transform_indices = @transform_7, window_bounds = array<i64: 1, 128>}, {transform_indices = @transform_8, window_bounds = array<i64: 2, 16, 128>}]} {
    %c0_i32 = arith.constant 0 : i32
    %0 = tpu.memref_slice %arg15[%c0_i32] : memref<3x!tpu.dma_semaphore, #tpu.memory_space<semaphore_mem>> -> memref<1x!tpu.dma_semaphore, #tpu.memory_space<semaphore_mem>>
    %1 = tpu.memref_squeeze %0 : memref<1x!tpu.dma_semaphore, #tpu.memory_space<semaphore_mem>> -> memref<!tpu.dma_semaphore, #tpu.memory_space<semaphore_mem>>
    tpu.enqueue_dma source(%arg2 : memref<640x128xf32, #tpu.memory_space<any>>) target(%arg10 : memref<640x128xf32, #tpu.memory_space<vmem>>) target_semaphore(%1 : memref<!tpu.dma_semaphore, #tpu.memory_space<semaphore_mem>>)
    %c1_i32 = arith.constant 1 : i32
    %2 = tpu.memref_slice %arg15[%c1_i32] : memref<3x!tpu.dma_semaphore, #tpu.memory_space<semaphore_mem>> -> memref<1x!tpu.dma_semaphore, #tpu.memory_space<semaphore_mem>>
    %3 = tpu.memref_squeeze %2 : memref<1x!tpu.dma_semaphore, #tpu.memory_space<semaphore_mem>> -> memref<!tpu.dma_semaphore, #tpu.memory_space<semaphore_mem>>
    tpu.enqueue_dma source(%arg3 : memref<3x640x128xf32, #tpu.memory_space<any>>) target(%arg11 : memref<3x640x128xf32, #tpu.memory_space<vmem>>) target_semaphore(%3 : memref<!tpu.dma_semaphore, #tpu.memory_space<semaphore_mem>>)
    %c2_i32 = arith.constant 2 : i32
    %4 = tpu.memref_slice %arg15[%c2_i32] : memref<3x!tpu.dma_semaphore, #tpu.memory_space<semaphore_mem>> -> memref<1x!tpu.dma_semaphore, #tpu.memory_space<semaphore_mem>>
    %5 = tpu.memref_squeeze %4 : memref<1x!tpu.dma_semaphore, #tpu.memory_space<semaphore_mem>> -> memref<!tpu.dma_semaphore, #tpu.memory_space<semaphore_mem>>
    tpu.enqueue_dma source(%arg4 : memref<640x128xf32, #tpu.memory_space<any>>) target(%arg12 : memref<640x128xf32, #tpu.memory_space<vmem>>) target_semaphore(%5 : memref<!tpu.dma_semaphore, #tpu.memory_space<semaphore_mem>>)
    %cst = arith.constant 0.000000e+00 : f32
    %6 = vector.broadcast %cst : f32 to vector<2x8x128xf32>
    %c0 = arith.constant 0 : index
    %c0_0 = arith.constant 0 : index
    %c0_1 = arith.constant 0 : index
    %7 = vector.load %arg13[%c0, %c0_0, %c0_1] : memref<2x32x128xf32, #tpu.memory_space<vmem>>, vector<2x8x128xf32>
    tpu.vector_store %arg13[%c0, %c0_0, %c0_1], %6 {strides = array<i32>} : memref<2x32x128xf32, #tpu.memory_space<vmem>>, vector<2x8x128xf32>,
    %c0_2 = arith.constant 0 : index
    %c24 = arith.constant 24 : index
    %c0_3 = arith.constant 0 : index
    %8 = vector.load %arg13[%c0_2, %c24, %c0_3] : memref<2x32x128xf32, #tpu.memory_space<vmem>>, vector<2x8x128xf32>
    tpu.vector_store %arg13[%c0_2, %c24, %c0_3], %6 {strides = array<i32>} : memref<2x32x128xf32, #tpu.memory_space<vmem>>, vector<2x8x128xf32>,
    %c0_4 = arith.constant 0 : index
    %c0_5 = arith.constant 0 : index
    %c0_6 = arith.constant 0 : index
    %9 = vector.load %arg14[%c0_4, %c0_5, %c0_6] : memref<2x32x128xf32, #tpu.memory_space<vmem>>, vector<2x8x128xf32>
    tpu.vector_store %arg14[%c0_4, %c0_5, %c0_6], %6 {strides = array<i32>} : memref<2x32x128xf32, #tpu.memory_space<vmem>>, vector<2x8x128xf32>,
    %c0_7 = arith.constant 0 : index
    %c24_8 = arith.constant 24 : index
    %c0_9 = arith.constant 0 : index
    %10 = vector.load %arg14[%c0_7, %c24_8, %c0_9] : memref<2x32x128xf32, #tpu.memory_space<vmem>>, vector<2x8x128xf32>
    tpu.vector_store %arg14[%c0_7, %c24_8, %c0_9], %6 {strides = array<i32>} : memref<2x32x128xf32, #tpu.memory_space<vmem>>, vector<2x8x128xf32>,
    %c0_i32_10 = arith.constant 0 : i32
    %11 = tpu.memref_slice %arg15[%c0_i32_10] : memref<3x!tpu.dma_semaphore, #tpu.memory_space<semaphore_mem>> -> memref<1x!tpu.dma_semaphore, #tpu.memory_space<semaphore_mem>>
    %12 = tpu.memref_squeeze %11 : memref<1x!tpu.dma_semaphore, #tpu.memory_space<semaphore_mem>> -> memref<!tpu.dma_semaphore, #tpu.memory_space<semaphore_mem>>
    tpu.wait_dma2 semaphore(%12 : memref<!tpu.dma_semaphore, #tpu.memory_space<semaphore_mem>>) src(%arg2 : memref<640x128xf32, #tpu.memory_space<any>>) dst(%arg10 : memref<640x128xf32, #tpu.memory_space<vmem>>)
    %c0_11 = arith.constant 0 : index
    %c0_12 = arith.constant 0 : index
    %13 = vector.load %arg10[%c0_11, %c0_12] : memref<640x128xf32, #tpu.memory_space<vmem>>, vector<640x128xf32>
    %c0_13 = arith.constant 0 : index
    %c0_14 = arith.constant 0 : index
    %c0_15 = arith.constant 0 : index
    %14 = vector.load %arg5[%c0_13, %c0_14, %c0_15] : memref<4x1x128xf32, #tpu.memory_space<vmem>>, vector<1x1x128xf32>
    %15 = vector.shape_cast %14 : vector<1x1x128xf32> to vector<1x128xf32>
    %c0_16 = arith.constant 0 : index
    %c0_17 = arith.constant 0 : index
    %c0_18 = arith.constant 0 : index
    %16 = vector.load %arg6[%c0_16, %c0_17, %c0_18] : memref<4x1x128xf32, #tpu.memory_space<vmem>>, vector<1x1x128xf32>
    %17 = vector.shape_cast %16 : vector<1x1x128xf32> to vector<1x128xf32>
    %c0_19 = arith.constant 0 : index
    %c6 = arith.constant 6 : index
    %c0_20 = arith.constant 0 : index
    %18 = vector.load %arg1[%c0_19, %c6, %c0_20] : memref<2x32x128xf32, #tpu.memory_space<vmem>>, vector<2x16x128xf32>
    %c0_21 = arith.constant 0 : index
    %c7 = arith.constant 7 : index
    %c0_22 = arith.constant 0 : index
    %19 = vector.load %arg1[%c0_21, %c7, %c0_22] : memref<2x32x128xf32, #tpu.memory_space<vmem>>, vector<2x16x128xf32>
    %c0_23 = arith.constant 0 : index
    %c8 = arith.constant 8 : index
    %c0_24 = arith.constant 0 : index
    %20 = vector.load %arg1[%c0_23, %c8, %c0_24] : memref<2x32x128xf32, #tpu.memory_space<vmem>>, vector<2x16x128xf32>
    %c0_25 = arith.constant 0 : index
    %c9 = arith.constant 9 : index
    %c0_26 = arith.constant 0 : index
    %21 = vector.load %arg1[%c0_25, %c9, %c0_26] : memref<2x32x128xf32, #tpu.memory_space<vmem>>, vector<2x16x128xf32>
    %c0_27 = arith.constant 0 : index
    %c10 = arith.constant 10 : index
    %c0_28 = arith.constant 0 : index
    %22 = vector.load %arg1[%c0_27, %c10, %c0_28] : memref<2x32x128xf32, #tpu.memory_space<vmem>>, vector<2x16x128xf32>
    %23 = tpu.concatenate %18, %19, %20, %21, %22 in 2 : vector<2x16x128xf32>, vector<2x16x128xf32>, vector<2x16x128xf32>, vector<2x16x128xf32>, vector<2x16x128xf32> -> vector<2x16x640xf32>
    %24 = vector.shape_cast %23 : vector<2x16x640xf32> to vector<32x640xf32>
    %cst_29 = arith.constant dense<0.000000e+00> : vector<32x128xf32>
    %25 = tpu.matmul %24, %13, %cst_29 {dimension_numbers = #tpu.dot_dimension_numbers<[1], [0], [0], [1], [0, 0, 1, 1], [], []>} : vector<32x640xf32>, vector<640x128xf32>, vector<32x128xf32> -> vector<32x128xf32>
    %26 = vector.broadcast %15 : vector<1x128xf32> to vector<32x128xf32>
    %27 = arith.mulf %25, %26 : vector<32x128xf32>
    %28 = vector.broadcast %17 : vector<1x128xf32> to vector<32x128xf32>
    %29 = arith.addf %27, %28 : vector<32x128xf32>
    %30 = math.tanh %29 : vector<32x128xf32>
    %31 = math.tanh %30 : vector<32x128xf32>
    %32 = math.tanh %31 : vector<32x128xf32>
    %33 = vector.shape_cast %32 : vector<32x128xf32> to vector<2x16x128xf32>
    %c0_30 = arith.constant 0 : index
    %c8_31 = arith.constant 8 : index
    %c0_32 = arith.constant 0 : index
    %34 = vector.load %arg13[%c0_30, %c8_31, %c0_32] : memref<2x32x128xf32, #tpu.memory_space<vmem>>, vector<2x16x128xf32>
    tpu.vector_store %arg13[%c0_30, %c8_31, %c0_32], %33 {strides = array<i32>} : memref<2x32x128xf32, #tpu.memory_space<vmem>>, vector<2x16x128xf32>,
    %c1_i32_33 = arith.constant 1 : i32
    %35 = tpu.memref_slice %arg15[%c1_i32_33] : memref<3x!tpu.dma_semaphore, #tpu.memory_space<semaphore_mem>> -> memref<1x!tpu.dma_semaphore, #tpu.memory_space<semaphore_mem>>
    %36 = tpu.memref_squeeze %35 : memref<1x!tpu.dma_semaphore, #tpu.memory_space<semaphore_mem>> -> memref<!tpu.dma_semaphore, #tpu.memory_space<semaphore_mem>>
    tpu.wait_dma2 semaphore(%36 : memref<!tpu.dma_semaphore, #tpu.memory_space<semaphore_mem>>) src(%arg3 : memref<3x640x128xf32, #tpu.memory_space<any>>) dst(%arg11 : memref<3x640x128xf32, #tpu.memory_space<vmem>>)
    %c0_34 = arith.constant 0 : index
    %c0_35 = arith.constant 0 : index
    %c0_36 = arith.constant 0 : index
    %37 = vector.load %arg11[%c0_34, %c0_35, %c0_36] : memref<3x640x128xf32, #tpu.memory_space<vmem>>, vector<1x640x128xf32>
    %38 = vector.shape_cast %37 : vector<1x640x128xf32> to vector<640x128xf32>
    %c1 = arith.constant 1 : index
    %c0_37 = arith.constant 0 : index
    %c0_38 = arith.constant 0 : index
    %39 = vector.load %arg5[%c1, %c0_37, %c0_38] : memref<4x1x128xf32, #tpu.memory_space<vmem>>, vector<1x1x128xf32>
    %40 = vector.shape_cast %39 : vector<1x1x128xf32> to vector<1x128xf32>
    %c1_39 = arith.constant 1 : index
    %c0_40 = arith.constant 0 : index
    %c0_41 = arith.constant 0 : index
    %41 = vector.load %arg6[%c1_39, %c0_40, %c0_41] : memref<4x1x128xf32, #tpu.memory_space<vmem>>, vector<1x1x128xf32>
    %42 = vector.shape_cast %41 : vector<1x1x128xf32> to vector<1x128xf32>
    %c0_42 = arith.constant 0 : index
    %c6_43 = arith.constant 6 : index
    %c0_44 = arith.constant 0 : index
    %43 = vector.load %arg13[%c0_42, %c6_43, %c0_44] : memref<2x32x128xf32, #tpu.memory_space<vmem>>, vector<2x16x128xf32>
    %c0_45 = arith.constant 0 : index
    %c7_46 = arith.constant 7 : index
    %c0_47 = arith.constant 0 : index
    %44 = vector.load %arg13[%c0_45, %c7_46, %c0_47] : memref<2x32x128xf32, #tpu.memory_space<vmem>>, vector<2x16x128xf32>
    %c0_48 = arith.constant 0 : index
    %c8_49 = arith.constant 8 : index
    %c0_50 = arith.constant 0 : index
    %45 = vector.load %arg13[%c0_48, %c8_49, %c0_50] : memref<2x32x128xf32, #tpu.memory_space<vmem>>, vector<2x16x128xf32>
    %c0_51 = arith.constant 0 : index
    %c9_52 = arith.constant 9 : index
    %c0_53 = arith.constant 0 : index
    %46 = vector.load %arg13[%c0_51, %c9_52, %c0_53] : memref<2x32x128xf32, #tpu.memory_space<vmem>>, vector<2x16x128xf32>
    %c0_54 = arith.constant 0 : index
    %c10_55 = arith.constant 10 : index
    %c0_56 = arith.constant 0 : index
    %47 = vector.load %arg13[%c0_54, %c10_55, %c0_56] : memref<2x32x128xf32, #tpu.memory_space<vmem>>, vector<2x16x128xf32>
    %48 = tpu.concatenate %43, %44, %45, %46, %47 in 2 : vector<2x16x128xf32>, vector<2x16x128xf32>, vector<2x16x128xf32>, vector<2x16x128xf32>, vector<2x16x128xf32> -> vector<2x16x640xf32>
    %49 = vector.shape_cast %48 : vector<2x16x640xf32> to vector<32x640xf32>
    %cst_57 = arith.constant dense<0.000000e+00> : vector<32x128xf32>
    %50 = tpu.matmul %49, %38, %cst_57 {dimension_numbers = #tpu.dot_dimension_numbers<[1], [0], [0], [1], [0, 0, 1, 1], [], []>} : vector<32x640xf32>, vector<640x128xf32>, vector<32x128xf32> -> vector<32x128xf32>
    %51 = vector.broadcast %40 : vector<1x128xf32> to vector<32x128xf32>
    %52 = arith.mulf %50, %51 : vector<32x128xf32>
    %53 = vector.broadcast %42 : vector<1x128xf32> to vector<32x128xf32>
    %54 = arith.addf %52, %53 : vector<32x128xf32>
    %55 = math.tanh %54 : vector<32x128xf32>
    %56 = math.tanh %55 : vector<32x128xf32>
    %57 = math.tanh %56 : vector<32x128xf32>
    %58 = vector.shape_cast %57 : vector<32x128xf32> to vector<2x16x128xf32>
    %c0_58 = arith.constant 0 : index
    %c8_59 = arith.constant 8 : index
    %c0_60 = arith.constant 0 : index
    %59 = vector.load %arg14[%c0_58, %c8_59, %c0_60] : memref<2x32x128xf32, #tpu.memory_space<vmem>>, vector<2x16x128xf32>
    tpu.vector_store %arg14[%c0_58, %c8_59, %c0_60], %58 {strides = array<i32>} : memref<2x32x128xf32, #tpu.memory_space<vmem>>, vector<2x16x128xf32>,
    %c1_61 = arith.constant 1 : index
    %c0_62 = arith.constant 0 : index
    %c0_63 = arith.constant 0 : index
    %60 = vector.load %arg11[%c1_61, %c0_62, %c0_63] : memref<3x640x128xf32, #tpu.memory_space<vmem>>, vector<1x640x128xf32>
    %61 = vector.shape_cast %60 : vector<1x640x128xf32> to vector<640x128xf32>
    %c2 = arith.constant 2 : index
    %c0_64 = arith.constant 0 : index
    %c0_65 = arith.constant 0 : index
    %62 = vector.load %arg5[%c2, %c0_64, %c0_65] : memref<4x1x128xf32, #tpu.memory_space<vmem>>, vector<1x1x128xf32>
    %63 = vector.shape_cast %62 : vector<1x1x128xf32> to vector<1x128xf32>
    %c2_66 = arith.constant 2 : index
    %c0_67 = arith.constant 0 : index
    %c0_68 = arith.constant 0 : index
    %64 = vector.load %arg6[%c2_66, %c0_67, %c0_68] : memref<4x1x128xf32, #tpu.memory_space<vmem>>, vector<1x1x128xf32>
    %65 = vector.shape_cast %64 : vector<1x1x128xf32> to vector<1x128xf32>
    %c0_69 = arith.constant 0 : index
    %c6_70 = arith.constant 6 : index
    %c0_71 = arith.constant 0 : index
    %66 = vector.load %arg14[%c0_69, %c6_70, %c0_71] : memref<2x32x128xf32, #tpu.memory_space<vmem>>, vector<2x16x128xf32>
    %c0_72 = arith.constant 0 : index
    %c7_73 = arith.constant 7 : index
    %c0_74 = arith.constant 0 : index
    %67 = vector.load %arg14[%c0_72, %c7_73, %c0_74] : memref<2x32x128xf32, #tpu.memory_space<vmem>>, vector<2x16x128xf32>
    %c0_75 = arith.constant 0 : index
    %c8_76 = arith.constant 8 : index
    %c0_77 = arith.constant 0 : index
    %68 = vector.load %arg14[%c0_75, %c8_76, %c0_77] : memref<2x32x128xf32, #tpu.memory_space<vmem>>, vector<2x16x128xf32>
    %c0_78 = arith.constant 0 : index
    %c9_79 = arith.constant 9 : index
    %c0_80 = arith.constant 0 : index
    %69 = vector.load %arg14[%c0_78, %c9_79, %c0_80] : memref<2x32x128xf32, #tpu.memory_space<vmem>>, vector<2x16x128xf32>
    %c0_81 = arith.constant 0 : index
    %c10_82 = arith.constant 10 : index
    %c0_83 = arith.constant 0 : index
    %70 = vector.load %arg14[%c0_81, %c10_82, %c0_83] : memref<2x32x128xf32, #tpu.memory_space<vmem>>, vector<2x16x128xf32>
    %71 = tpu.concatenate %66, %67, %68, %69, %70 in 2 : vector<2x16x128xf32>, vector<2x16x128xf32>, vector<2x16x128xf32>, vector<2x16x128xf32>, vector<2x16x128xf32> -> vector<2x16x640xf32>
    %72 = vector.shape_cast %71 : vector<2x16x640xf32> to vector<32x640xf32>
    %cst_84 = arith.constant dense<0.000000e+00> : vector<32x128xf32>
    %73 = tpu.matmul %72, %61, %cst_84 {dimension_numbers = #tpu.dot_dimension_numbers<[1], [0], [0], [1], [0, 0, 1, 1], [], []>} : vector<32x640xf32>, vector<640x128xf32>, vector<32x128xf32> -> vector<32x128xf32>
    %74 = vector.broadcast %63 : vector<1x128xf32> to vector<32x128xf32>
    %75 = arith.mulf %73, %74 : vector<32x128xf32>
    %76 = vector.broadcast %65 : vector<1x128xf32> to vector<32x128xf32>
    %77 = arith.addf %75, %76 : vector<32x128xf32>
    %78 = math.tanh %77 : vector<32x128xf32>
    %79 = math.tanh %78 : vector<32x128xf32>
    %80 = math.tanh %79 : vector<32x128xf32>
    %81 = vector.shape_cast %80 : vector<32x128xf32> to vector<2x16x128xf32>
    %c0_85 = arith.constant 0 : index
    %c8_86 = arith.constant 8 : index
    %c0_87 = arith.constant 0 : index
    %82 = vector.load %arg13[%c0_85, %c8_86, %c0_87] : memref<2x32x128xf32, #tpu.memory_space<vmem>>, vector<2x16x128xf32>
    tpu.vector_store %arg13[%c0_85, %c8_86, %c0_87], %81 {strides = array<i32>} : memref<2x32x128xf32, #tpu.memory_space<vmem>>, vector<2x16x128xf32>,
    %c2_88 = arith.constant 2 : index
    %c0_89 = arith.constant 0 : index
    %c0_90 = arith.constant 0 : index
    %83 = vector.load %arg11[%c2_88, %c0_89, %c0_90] : memref<3x640x128xf32, #tpu.memory_space<vmem>>, vector<1x640x128xf32>
    %84 = vector.shape_cast %83 : vector<1x640x128xf32> to vector<640x128xf32>
    %c3 = arith.constant 3 : index
    %c0_91 = arith.constant 0 : index
    %c0_92 = arith.constant 0 : index
    %85 = vector.load %arg5[%c3, %c0_91, %c0_92] : memref<4x1x128xf32, #tpu.memory_space<vmem>>, vector<1x1x128xf32>
    %86 = vector.shape_cast %85 : vector<1x1x128xf32> to vector<1x128xf32>
    %c3_93 = arith.constant 3 : index
    %c0_94 = arith.constant 0 : index
    %c0_95 = arith.constant 0 : index
    %87 = vector.load %arg6[%c3_93, %c0_94, %c0_95] : memref<4x1x128xf32, #tpu.memory_space<vmem>>, vector<1x1x128xf32>
    %88 = vector.shape_cast %87 : vector<1x1x128xf32> to vector<1x128xf32>
    %c0_96 = arith.constant 0 : index
    %c6_97 = arith.constant 6 : index
    %c0_98 = arith.constant 0 : index
    %89 = vector.load %arg13[%c0_96, %c6_97, %c0_98] : memref<2x32x128xf32, #tpu.memory_space<vmem>>, vector<2x16x128xf32>
    %c0_99 = arith.constant 0 : index
    %c7_100 = arith.constant 7 : index
    %c0_101 = arith.constant 0 : index
    %90 = vector.load %arg13[%c0_99, %c7_100, %c0_101] : memref<2x32x128xf32, #tpu.memory_space<vmem>>, vector<2x16x128xf32>
    %c0_102 = arith.constant 0 : index
    %c8_103 = arith.constant 8 : index
    %c0_104 = arith.constant 0 : index
    %91 = vector.load %arg13[%c0_102, %c8_103, %c0_104] : memref<2x32x128xf32, #tpu.memory_space<vmem>>, vector<2x16x128xf32>
    %c0_105 = arith.constant 0 : index
    %c9_106 = arith.constant 9 : index
    %c0_107 = arith.constant 0 : index
    %92 = vector.load %arg13[%c0_105, %c9_106, %c0_107] : memref<2x32x128xf32, #tpu.memory_space<vmem>>, vector<2x16x128xf32>
    %c0_108 = arith.constant 0 : index
    %c10_109 = arith.constant 10 : index
    %c0_110 = arith.constant 0 : index
    %93 = vector.load %arg13[%c0_108, %c10_109, %c0_110] : memref<2x32x128xf32, #tpu.memory_space<vmem>>, vector<2x16x128xf32>
    %94 = tpu.concatenate %89, %90, %91, %92, %93 in 2 : vector<2x16x128xf32>, vector<2x16x128xf32>, vector<2x16x128xf32>, vector<2x16x128xf32>, vector<2x16x128xf32> -> vector<2x16x640xf32>
    %95 = vector.shape_cast %94 : vector<2x16x640xf32> to vector<32x640xf32>
    %cst_111 = arith.constant dense<0.000000e+00> : vector<32x128xf32>
    %96 = tpu.matmul %95, %84, %cst_111 {dimension_numbers = #tpu.dot_dimension_numbers<[1], [0], [0], [1], [0, 0, 1, 1], [], []>} : vector<32x640xf32>, vector<640x128xf32>, vector<32x128xf32> -> vector<32x128xf32>
    %97 = vector.broadcast %86 : vector<1x128xf32> to vector<32x128xf32>
    %98 = arith.mulf %96, %97 : vector<32x128xf32>
    %99 = vector.broadcast %88 : vector<1x128xf32> to vector<32x128xf32>
    %100 = arith.addf %98, %99 : vector<32x128xf32>
    %101 = math.tanh %100 : vector<32x128xf32>
    %102 = math.tanh %101 : vector<32x128xf32>
    %103 = math.tanh %102 : vector<32x128xf32>
    %104 = vector.shape_cast %103 : vector<32x128xf32> to vector<2x16x128xf32>
    %c0_112 = arith.constant 0 : index
    %c8_113 = arith.constant 8 : index
    %c0_114 = arith.constant 0 : index
    %105 = vector.load %arg14[%c0_112, %c8_113, %c0_114] : memref<2x32x128xf32, #tpu.memory_space<vmem>>, vector<2x16x128xf32>
    tpu.vector_store %arg14[%c0_112, %c8_113, %c0_114], %104 {strides = array<i32>} : memref<2x32x128xf32, #tpu.memory_space<vmem>>, vector<2x16x128xf32>,
    %c2_i32_115 = arith.constant 2 : i32
    %106 = tpu.memref_slice %arg15[%c2_i32_115] : memref<3x!tpu.dma_semaphore, #tpu.memory_space<semaphore_mem>> -> memref<1x!tpu.dma_semaphore, #tpu.memory_space<semaphore_mem>>
    %107 = tpu.memref_squeeze %106 : memref<1x!tpu.dma_semaphore, #tpu.memory_space<semaphore_mem>> -> memref<!tpu.dma_semaphore, #tpu.memory_space<semaphore_mem>>
    tpu.wait_dma2 semaphore(%107 : memref<!tpu.dma_semaphore, #tpu.memory_space<semaphore_mem>>) src(%arg4 : memref<640x128xf32, #tpu.memory_space<any>>) dst(%arg12 : memref<640x128xf32, #tpu.memory_space<vmem>>)
    %c0_116 = arith.constant 0 : index
    %c0_117 = arith.constant 0 : index
    %108 = vector.load %arg12[%c0_116, %c0_117] : memref<640x128xf32, #tpu.memory_space<vmem>>, vector<640x128xf32>
    %c0_118 = arith.constant 0 : index
    %c0_119 = arith.constant 0 : index
    %109 = vector.load %arg7[%c0_118, %c0_119] : memref<1x128xf32, #tpu.memory_space<vmem>>, vector<1x128xf32>
    %c0_120 = arith.constant 0 : index
    %c0_121 = arith.constant 0 : index
    %110 = vector.load %arg8[%c0_120, %c0_121] : memref<1x128xf32, #tpu.memory_space<vmem>>, vector<1x128xf32>
    %c0_122 = arith.constant 0 : index
    %c6_123 = arith.constant 6 : index
    %c0_124 = arith.constant 0 : index
    %111 = vector.load %arg14[%c0_122, %c6_123, %c0_124] : memref<2x32x128xf32, #tpu.memory_space<vmem>>, vector<2x16x128xf32>
    %c0_125 = arith.constant 0 : index
    %c7_126 = arith.constant 7 : index
    %c0_127 = arith.constant 0 : index
    %112 = vector.load %arg14[%c0_125, %c7_126, %c0_127] : memref<2x32x128xf32, #tpu.memory_space<vmem>>, vector<2x16x128xf32>
    %c0_128 = arith.constant 0 : index
    %c8_129 = arith.constant 8 : index
    %c0_130 = arith.constant 0 : index
    %113 = vector.load %arg14[%c0_128, %c8_129, %c0_130] : memref<2x32x128xf32, #tpu.memory_space<vmem>>, vector<2x16x128xf32>
    %c0_131 = arith.constant 0 : index
    %c9_132 = arith.constant 9 : index
    %c0_133 = arith.constant 0 : index
    %114 = vector.load %arg14[%c0_131, %c9_132, %c0_133] : memref<2x32x128xf32, #tpu.memory_space<vmem>>, vector<2x16x128xf32>
    %c0_134 = arith.constant 0 : index
    %c10_135 = arith.constant 10 : index
    %c0_136 = arith.constant 0 : index
    %115 = vector.load %arg14[%c0_134, %c10_135, %c0_136] : memref<2x32x128xf32, #tpu.memory_space<vmem>>, vector<2x16x128xf32>
    %116 = tpu.concatenate %111, %112, %113, %114, %115 in 2 : vector<2x16x128xf32>, vector<2x16x128xf32>, vector<2x16x128xf32>, vector<2x16x128xf32>, vector<2x16x128xf32> -> vector<2x16x640xf32>
    %117 = vector.shape_cast %116 : vector<2x16x640xf32> to vector<32x640xf32>
    %cst_137 = arith.constant dense<0.000000e+00> : vector<32x128xf32>
    %118 = tpu.matmul %117, %108, %cst_137 {dimension_numbers = #tpu.dot_dimension_numbers<[1], [0], [0], [1], [0, 0, 1, 1], [], []>} : vector<32x640xf32>, vector<640x128xf32>, vector<32x128xf32> -> vector<32x128xf32>
    %119 = vector.broadcast %109 : vector<1x128xf32> to vector<32x128xf32>
    %120 = arith.mulf %118, %119 : vector<32x128xf32>
    %121 = vector.broadcast %110 : vector<1x128xf32> to vector<32x128xf32>
    %122 = arith.addf %120, %121 : vector<32x128xf32>
    %123 = vector.shape_cast %122 : vector<32x128xf32> to vector<2x16x128xf32>
    %c0_138 = arith.constant 0 : index
    %c0_139 = arith.constant 0 : index
    %c0_140 = arith.constant 0 : index
    %124 = vector.load %arg9[%c0_138, %c0_139, %c0_140] : memref<2x16x128xf32, #tpu.memory_space<vmem>>, vector<2x16x128xf32>
    tpu.vector_store %arg9[%c0_138, %c0_139, %c0_140], %123 {strides = array<i32>} : memref<2x16x128xf32, #tpu.memory_space<vmem>>, vector<2x16x128xf32>,
    return
  }
  func.func @transform_0(%arg0: i32) -> (i32, i32, i32) {
    %c0_i32 = arith.constant 0 : i32
    %c0_i32_0 = arith.constant 0 : i32
    %c0_i32_1 = arith.constant 0 : i32
    return %arg0, %c0_i32, %c0_i32_0 : i32, i32, i32
  }
  func.func @transform_4(%arg0: i32) -> (i32, i32, i32) {
    %c0_i32 = arith.constant 0 : i32
    %c0_i32_0 = arith.constant 0 : i32
    %c0_i32_1 = arith.constant 0 : i32
    %c0_i32_2 = arith.constant 0 : i32
    return %c0_i32, %c0_i32_0, %c0_i32_1 : i32, i32, i32
  }
  func.func @transform_5(%arg0: i32) -> (i32, i32, i32) {
    %c0_i32 = arith.constant 0 : i32
    %c0_i32_0 = arith.constant 0 : i32
    %c0_i32_1 = arith.constant 0 : i32
    %c0_i32_2 = arith.constant 0 : i32
    return %c0_i32, %c0_i32_0, %c0_i32_1 : i32, i32, i32
  }
  func.func @transform_6(%arg0: i32) -> (i32, i32) {
    %c0_i32 = arith.constant 0 : i32
    %c0_i32_0 = arith.constant 0 : i32
    %c0_i32_1 = arith.constant 0 : i32
    return %c0_i32, %c0_i32_0 : i32, i32
  }
  func.func @transform_7(%arg0: i32) -> (i32, i32) {
    %c0_i32 = arith.constant 0 : i32
    %c0_i32_0 = arith.constant 0 : i32
    %c0_i32_1 = arith.constant 0 : i32
    return %c0_i32, %c0_i32_0 : i32, i32
  }
  func.func @transform_8(%arg0: i32) -> (i32, i32, i32) {
    %c0_i32 = arith.constant 0 : i32
    %c0_i32_0 = arith.constant 0 : i32
    %c0_i32_1 = arith.constant 0 : i32
    return %arg0, %c0_i32, %c0_i32_0 : i32, i32, i32
  }
}

</mosaic_0001>

<bundles_post_ra>
// kernel: postnet_forward.1
= control target key start
LH: loop header
LB: loop body
LE: loop exit
PB: predicated region body
PF: predicated region fallthrough
CT: control target
= control target key end

     0   :  { %s3007_s27 = smov [#allocation2]   ;;  %s3008_s29 = smov [#allocation3]   ;;  %v3009_v0 = vmov 0.0   ;;  %s3175_s0 = inlined_call_operand.vmem [shape: f32[2,32,128], index: 0, kind: input, shape index: {}]   ;;  %s3176_s1 = inlined_call_operand.hbm [shape: f32[640,128], index: 1, kind: input, shape index: {}]   ;;  %s3177_s4 = inlined_call_operand.vmem [shape: f32[4,1,128], index: 4, kind: input, shape index: {}]   ;;  %s3178_s5 = inlined_call_operand.vmem [shape: f32[4,1,128], index: 5, kind: input, shape index: {}]   ;;  %s3179_s6 = inlined_call_operand.vmem [shape: f32[1,128], index: 6, kind: input, shape index: {}]   ;;  %s3180_s7 = inlined_call_operand.vmem [shape: f32[1,128], index: 7, kind: input, shape index: {}]   ;;  %s3181_s8 = inlined_call_operand.vmem [shape: f32[2,16,128], index: 8, kind: output, shape index: {}]   ;;  %s3182_s2 = inlined_call_operand.hbm [shape: f32[3,640,128], index: 2, kind: input, shape index: {}]   ;;  %s3183_s3 = inlined_call_operand.hbm [shape: f32[640,128], index: 3, kind: input, shape index: {}]  }
   0x1   :  { %s30_s28 = sshll.u32 %s3007_s27, 4  ;;  %s42_s30 = sshll.u32 %s3008_s29, 4  ;;  %58 = vst [vmem:[#allocation5] sm:$0xff] %v3009_v0  ;;  %59 = vst [vmem:[#allocation5 + $0x20] sm:$0xff] %v3009_v0  ;;  %s31_s28 = int_to_ptr.vmem [resolvable:$true] %s30_s28  ;;  %s43_s30 = int_to_ptr.vmem [resolvable:$true] %s42_s30 }
   0x2   :  { %60 = vst [vmem:[#allocation5 + $0x18] sm:$0xff] %v3009_v0  ;;  %61 = vst [vmem:[#allocation5 + $0x38] sm:$0xff] %v3009_v0  ;;  %s2949_s9 = scalar_lea.vmem %s31_s28, 10240  ;;  %p2954_p1 = scmp.lt.s32.totalorder %s31_s28, %s31_s28 }
   0x3   :  { %62 = vst [vmem:[#allocation6] sm:$0xff] %v3009_v0  ;;  %63 = vst [vmem:[#allocation6 + $0x20] sm:$0xff] %v3009_v0  ;;  %p2950_p0 = scmp.ne.s32.totalorder %s31_s28, %s2949_s9  ;;  %p2955_p2 = scmp.lt.s32.totalorder %s2949_s9, %s2949_s9 }
   0x4   :  { %64 = vst [vmem:[#allocation6 + $0x18] sm:$0xff] %v3009_v0  ;;  %65 = vst [vmem:[#allocation6 + $0x38] sm:$0xff] %v3009_v0 }
   0x5   :  { %p2956_p3 = por %p2955_p2, %p2954_p1 }
   0x7   :  { %p2957_p4 = pnand %p2956_p3, %p2950_p0 }
   0x9   :  { %2960 = shalt.err (!%p2957_p4)  }
   0xa   :  { %33 = dma.hbm_to_vmem [thread:$0]  %s3176_s1, 10240, %s31_s28, [#allocation7] }
   0xb   :  { %s2969_s12 = scalar_lea.vmem %s43_s30, 30720  ;;  %p2974_p6 = scmp.lt.s32.totalorder %s43_s30, %s43_s30 }
   0xc   :  { %p2970_p5 = scmp.ne.s32.totalorder %s43_s30, %s2969_s12  ;;  %p2975_p7 = scmp.lt.s32.totalorder %s2969_s12, %s2969_s12 }
   0xe   :  { %p2976_p8 = por %p2975_p7, %p2974_p6 }
  0x10   :  { %p2977_p9 = pnand %p2976_p8, %p2970_p5 }
  0x12   :  { %2980 = shalt.err (!%p2977_p9)  }
  0x13   :  { %45 = dma.hbm_to_vmem [thread:$0]  %s3182_s2, 30720, %s43_s30, [#allocation7 + $0x1] }
  0x14   :  { %s3010_s15 = smov [#allocation4]  }
  0x15   :  { %s54_s16 = sshll.u32 %s3010_s15, 4  ;;  %s55_s16 = int_to_ptr.vmem [resolvable:$true] %s54_s16 }
  0x16   :  { %s2989_s17 = scalar_lea.vmem %s55_s16, 10240  ;;  %p2994_p11 = scmp.lt.s32.totalorder %s55_s16, %s55_s16 }
  0x17   :  { %p2990_p10 = scmp.ne.s32.totalorder %s55_s16, %s2989_s17  ;;  %p2995_p12 = scmp.lt.s32.totalorder %s2989_s17, %s2989_s17 }
  0x19   :  { %p2996_p13 = por %p2995_p12, %p2994_p11 }
  0x1b   :  { %p2997_p0 = pnand %p2996_p13, %p2990_p10 }
  0x1d   :  { %3000 = shalt.err (!%p2997_p0)  }
  0x1e   :  { %57 = dma.hbm_to_vmem [thread:$0]  %s3183_s3, 10240, %s55_s16, [#allocation7 + $0x2] }
  0x1f   :  { %3001 = dma.done.wait [#allocation7], 10240 }
  0x20   :  { %3002 = vsyncadd [#allocation7], 4294957056  ;;  %v100_v1 = vld [vmem:[#allocation2 + $0xf8] sm:$0xff]  ;;  %v99_v5 = vld [vmem:[#allocation2 + $0xf0] sm:$0xff] }
  0x21   :  { %v132_v2 = vld [vmem:[#allocation2 + $0x1f8] sm:$0xff]  ;;  %2079 = vmatprep.subr.mxu0 %v100_v1  ;;  %v131_v6 = vld [vmem:[#allocation2 + $0x1f0] sm:$0xff]  ;;  %v98_v9 = vld [vmem:[#allocation2 + $0xe8] sm:$0xff] }
  0x22   :  { %v84_v3 = vld [vmem:[#allocation2 + $0x78] sm:$0xff]  ;;  %2123 = vmatprep.subr.mxu1 %v132_v2  ;;  %v83_v7 = vld [vmem:[#allocation2 + $0x70] sm:$0xff]  ;;  %v130_v10 = vld [vmem:[#allocation2 + $0x1e8] sm:$0xff] }
  0x23   :  { %v116_v4 = vld [vmem:[#allocation2 + $0x178] sm:$0xff]  ;;  %2080 = vmatpush3.msra.mxu0 %v84_v3  ;;  %v115_v8 = vld [vmem:[#allocation2 + $0x170] sm:$0xff]  ;;  %v82_v11 = vld [vmem:[#allocation2 + $0x68] sm:$0xff] }
  0x24   :  { %2124 = vmatpush3.msra.mxu1 %v116_v4  ;;  %2081 = vmatprep.subr.mxu0 %v99_v5  ;;  %v114_v12 = vld [vmem:[#allocation2 + $0x168] sm:$0xff]  ;;  %v97_v13 = vld [vmem:[#allocation2 + $0xe0] sm:$0xff]  ;;  %v96_v17 = vld [vmem:[#allocation2 + $0xd8] sm:$0xff] }
  0x25   :  { %2125 = vmatprep.subr.mxu1 %v131_v6  ;;  %2082 = vmatpush3.msra.mxu0 %v83_v7  ;;  %v129_v14 = vld [vmem:[#allocation2 + $0x1e0] sm:$0xff]  ;;  %v128_v18 = vld [vmem:[#allocation2 + $0x1d8] sm:$0xff]  ;;  %v95_v21 = vld [vmem:[#allocation2 + $0xd0] sm:$0xff] }
  0x26   :  { %2126 = vmatpush3.msra.mxu1 %v115_v8  ;;  %2083 = vmatprep.subr.mxu0 %v98_v9  ;;  %v81_v15 = vld [vmem:[#allocation2 + $0x60] sm:$0xff]  ;;  %v80_v19 = vld [vmem:[#allocation2 + $0x58] sm:$0xff]  ;;  %v127_v22 = vld [vmem:[#allocation2 + $0x1d0] sm:$0xff] }
  0x27   :  { %2127 = vmatprep.subr.mxu1 %v130_v10  ;;  %v113_v16 = vld [vmem:[#allocation2 + $0x160] sm:$0xff]  ;;  %2084 = vmatpush3.msra.mxu0 %v82_v11  ;;  %v112_v20 = vld [vmem:[#allocation2 + $0x158] sm:$0xff]  ;;  %v79_v23 = vld [vmem:[#allocation2 + $0x50] sm:$0xff] }
  0x28   :  { %2128 = vmatpush3.msra.mxu1 %v114_v12  ;;  %2085 = vmatprep.subr.mxu0 %v97_v13  ;;  %v111_v24 = vld [vmem:[#allocation2 + $0x150] sm:$0xff]  ;;  %v94_v25 = vld [vmem:[#allocation2 + $0xc8] sm:$0xff]  ;;  %v93_v29 = vld [vmem:[#allocation2 + $0xc0] sm:$0xff] }
  0x29   :  { %2129 = vmatprep.subr.mxu1 %v129_v14  ;;  %2086 = vmatpush3.msra.mxu0 %v81_v15  ;;  %v126_v26 = vld [vmem:[#allocation2 + $0x1c8] sm:$0xff]  ;;  %v125_v30 = vld [vmem:[#allocation2 + $0x1c0] sm:$0xff]  ;;  %v92_v33 = vld [vmem:[#allocation2 + $0xb8] sm:$0xff] }
  0x2a   :  { %2130 = vmatpush3.msra.mxu1 %v113_v16  ;;  %2087 = vmatprep.subr.mxu0 %v96_v17  ;;  %v78_v27 = vld [vmem:[#allocation2 + $0x48] sm:$0xff]  ;;  %v77_v31 = vld [vmem:[#allocation2 + $0x40] sm:$0xff]  ;;  %v124_v34 = vld [vmem:[#allocation2 + $0x1b8] sm:$0xff] }
  0x2b   :  { %2131 = vmatprep.subr.mxu1 %v128_v18  ;;  %2088 = vmatpush3.msra.mxu0 %v80_v19  ;;  %v110_v28 = vld [vmem:[#allocation2 + $0x148] sm:$0xff]  ;;  %v109_v32 = vld [vmem:[#allocation2 + $0x140] sm:$0xff]  ;;  %v76_v35 = vld [vmem:[#allocation2 + $0x38] sm:$0xff] }
  0x2c   :  { %2132 = vmatpush3.msra.mxu1 %v112_v20  ;;  %2089 = vmatprep.subr.mxu0 %v95_v21  ;;  %v108_v36 = vld [vmem:[#allocation2 + $0x138] sm:$0xff]  ;;  %v91_v37 = vld [vmem:[#allocation2 + $0xb0] sm:$0xff]  ;;  %v90_v41 = vld [vmem:[#allocation2 + $0xa8] sm:$0xff] }
  0x2d   :  { %2133 = vmatprep.subr.mxu1 %v127_v22  ;;  %2090 = vmatpush3.msra.mxu0 %v79_v23  ;;  %v123_v38 = vld [vmem:[#allocation2 + $0x1b0] sm:$0xff]  ;;  %v122_v42 = vld [vmem:[#allocation2 + $0x1a8] sm:$0xff]  ;;  %v89_v45 = vld [vmem:[#allocation2 + $0xa0] sm:$0xff] }
  0x2e   :  { %2134 = vmatpush3.msra.mxu1 %v111_v24  ;;  %2091 = vmatprep.subr.mxu0 %v94_v25  ;;  %v75_v39 = vld [vmem:[#allocation2 + $0x30] sm:$0xff]  ;;  %v74_v43 = vld [vmem:[#allocation2 + $0x28] sm:$0xff]  ;;  %v121_v46 = vld [vmem:[#allocation2 + $0x1a0] sm:$0xff] }
  0x2f   :  { %2135 = vmatprep.subr.mxu1 %v126_v26  ;;  %2092 = vmatpush3.msra.mxu0 %v78_v27  ;;  %v107_v40 = vld [vmem:[#allocation2 + $0x130] sm:$0xff]  ;;  %v106_v44 = vld [vmem:[#allocation2 + $0x128] sm:$0xff]  ;;  %v73_v47 = vld [vmem:[#allocation2 + $0x20] sm:$0xff] }
  0x30   :  { %2136 = vmatpush3.msra.mxu1 %v110_v28  ;;  %2093 = vmatprep.subr.mxu0 %v93_v29  ;;  %v105_v48 = vld [vmem:[#allocation2 + $0x120] sm:$0xff]  ;;  %v88_v49 = vld [vmem:[#allocation2 + $0x98] sm:$0xff]  ;;  %v87_v53 = vld [vmem:[#allocation2 + $0x90] sm:$0xff] }
  0x31   :  { %2137 = vmatprep.subr.mxu1 %v125_v30  ;;  %2094 = vmatpush3.msra.mxu0 %v77_v31  ;;  %v120_v50 = vld [vmem:[#allocation2 + $0x198] sm:$0xff]  ;;  %v119_v54 = vld [vmem:[#allocation2 + $0x190] sm:$0xff]  ;;  %v86_v57 = vld [vmem:[#allocation2 + $0x88] sm:$0xff] }
  0x32   :  { %2138 = vmatpush3.msra.mxu1 %v109_v32  ;;  %2095 = vmatprep.subr.mxu0 %v92_v33  ;;  %v72_v51 = vld [vmem:[#allocation2 + $0x18] sm:$0xff]  ;;  %v71_v55 = vld [vmem:[#allocation2 + $0x10] sm:$0xff]  ;;  %v118_v58 = vld [vmem:[#allocation2 + $0x188] sm:$0xff] }
  0x33   :  { %2139 = vmatprep.subr.mxu1 %v124_v34  ;;  %2096 = vmatpush3.msra.mxu0 %v76_v35  ;;  %v104_v52 = vld [vmem:[#allocation2 + $0x118] sm:$0xff]  ;;  %v103_v56 = vld [vmem:[#allocation2 + $0x110] sm:$0xff]  ;;  %v70_v59 = vld [vmem:[#allocation2 + $0x8] sm:$0xff] }
  0x34   :  { %2140 = vmatpush3.msra.mxu1 %v108_v36  ;;  %2097 = vmatprep.subr.mxu0 %v91_v37  ;;  %v102_v60 = vld [vmem:[#allocation2 + $0x108] sm:$0xff]  ;;  %v85_v61 = vld [vmem:[#allocation2 + $0x80] sm:$0xff]  ;;  %v148_v5 = vld [vmem:[#allocation2 + $0x278] sm:$0xff] }
  0x35   :  { %2141 = vmatprep.subr.mxu1 %v123_v38  ;;  %2098 = vmatpush3.msra.mxu0 %v75_v39  ;;  %v117_v62 = vld [vmem:[#allocation2 + $0x180] sm:$0xff]  ;;  %v163_v2 = vld [vmem:[%s3175_s0 + $0x9] sm:$0xff]  ;;  %v164_v7 = vld [vmem:[%s3175_s0 + $0x11] sm:$0xff] }
  0x36   :  { %2142 = vmatpush3.msra.mxu1 %v107_v40  ;;  %2099 = vmatprep.subr.mxu0 %v90_v41  ;;  %v69_v63 = vld [vmem:[#allocation2] sm:$0xff]  ;;  %v159_v4 = vld [vmem:[%s3175_s0 + $0x8] sm:$0xff]  ;;  %v147_v8 = vld [vmem:[#allocation2 + $0x270] sm:$0xff] }
  0x37   :  { %2143 = vmatprep.subr.mxu1 %v122_v42  ;;  %2100 = vmatpush3.msra.mxu0 %v74_v43  ;;  %v155_v0 = vld [vmem:[%s3175_s0 + $0x7] sm:$0xff]  ;;  %v156_v6 = vld [vmem:[%s3175_s0 + $0xf] sm:$0xff]  ;;  %v144_v16 = vld [vmem:[#allocation2 + $0x258] sm:$0xff] }
  0x38   :  { %2144 = vmatpush3.msra.mxu1 %v106_v44  ;;  %2101 = vmatprep.subr.mxu0 %v89_v45  ;;  %v101_v1 = vld [vmem:[#allocation2 + $0x100] sm:$0xff]  ;;  %v160_v9 = vld [vmem:[%s3175_s0 + $0x10] sm:$0xff]  ;;  %v146_v10 = vld [vmem:[#allocation2 + $0x268] sm:$0xff] }
  0x39   :  { %2145 = vmatprep.subr.mxu1 %v121_v46  ;;  %2102 = vmatpush3.msra.mxu0 %v73_v47  ;;  %v151_v3 = vld [vmem:[%s3175_s0 + $0x6] sm:$0xff]  ;;  %v152_v11 = vld [vmem:[%s3175_s0 + $0xe] sm:$0xff]  ;;  %v140_v26 = vld [vmem:[#allocation2 + $0x238] sm:$0xff] }
  0x3a   :  { %2146 = vmatpush3.msra.mxu1 %v105_v48  ;;  %2103 = vmatprep.subr.mxu0 %v88_v49  ;;  %v157_v12 = vld [vmem:[%s3175_s0 + $0x27] sm:$0xff]  ;;  %v158_v18 = vld [vmem:[%s3175_s0 + $0x2f] sm:$0xff]  ;;  %v136_v30 = vld [vmem:[#allocation2 + $0x218] sm:$0xff] }
  0x3b   :  { %2147 = vmatprep.subr.mxu1 %v120_v50  ;;  %2104 = vmatpush3.msra.mxu0 %v72_v51  ;;  %v145_v13 = vld [vmem:[#allocation2 + $0x260] sm:$0xff]  ;;  %v165_v14 = vld [vmem:[%s3175_s0 + $0x29] sm:$0xff]  ;;  %v166_v20 = vld [vmem:[%s3175_s0 + $0x31] sm:$0xff] }
  0x3c   :  { %2148 = vmatpush3.msra.mxu1 %v104_v52  ;;  %2105 = vmatprep.subr.mxu0 %v87_v53  ;;  %v161_v15 = vld [vmem:[%s3175_s0 + $0x28] sm:$0xff]  ;;  %v143_v19 = vld [vmem:[#allocation2 + $0x250] sm:$0xff]  ;;  %v141_v25 = vld [vmem:[#allocation2 + $0x240] sm:$0xff] }
  0x3d   :  { %2149 = vmatprep.subr.mxu1 %v119_v54  ;;  %2106 = vmatpush3.msra.mxu0 %v71_v55  ;;  %v153_v17 = vld [vmem:[%s3175_s0 + $0x26] sm:$0xff]  ;;  %v162_v21 = vld [vmem:[%s3175_s0 + $0x30] sm:$0xff] }
  0x3e   :  { %2150 = vmatpush3.msra.mxu1 %v103_v56  ;;  %2107 = vmatprep.subr.mxu0 %v86_v57  ;;  %v142_v22 = vld [vmem:[#allocation2 + $0x248] sm:$0xff]  ;;  %v139_v27 = vld [vmem:[#allocation2 + $0x230] sm:$0xff]  ;;  %v137_v29 = vld [vmem:[#allocation2 + $0x220] sm:$0xff] }
  0x3f   :  { %2151 = vmatprep.subr.mxu1 %v118_v58  ;;  %2108 = vmatpush3.msra.mxu0 %v70_v59  ;;  %v154_v23 = vld [vmem:[%s3175_s0 + $0x2e] sm:$0xff]  ;;  %v133_v33 = vld [vmem:[#allocation2 + $0x200] sm:$0xff] }
  0x40   :  { %2152 = vmatpush3.msra.mxu1 %v102_v60  ;;  %2109 = vmatprep.subr.mxu0 %v85_v61  ;;  %v167_v24 = vld [vmem:[%s3175_s0 + $0xa] sm:$0xff]  ;;  %v168_v34 = vld [vmem:[%s3175_s0 + $0x12] sm:$0xff]  ;;  %v2060_v60 = vld [vmem:[%s3177_s4] ss:$0 sm:$0xff] }
  0x41   :  { %2153 = vmatprep.subr.mxu1 %v117_v62  ;;  %2110 = vmatpush3.msra.mxu0 %v69_v63  ;;  %v138_v28 = vld [vmem:[#allocation2 + $0x228] sm:$0xff]  ;;  %v135_v31 = vld [vmem:[#allocation2 + $0x210] sm:$0xff] }
  0x42   :  { %235 = vmatprep.mubr.f32.mxu0 %v155_v0  ;;  %2154 = vmatpush3.msra.mxu1 %v101_v1  ;;  %v134_v32 = vld [vmem:[#allocation2 + $0x208] sm:$0xff]  ;;  %v170_v36 = vld [vmem:[%s3175_s0 + $0x32] sm:$0xff] }
  0x43   :  { %320 = vmatprep.mubr.f32.mxu1 %v163_v2  ;;  %236 = vmatmul.mubr.f32.vlgmr.msra.gmra.mxu0 %v151_v3  ;;  %v169_v35 = vld [vmem:[%s3175_s0 + $0x2a] sm:$0xff]  ;;  %v2061_v2 = vld [vmem:[%s3178_s5] ss:$0 sm:$0xff] }
  0x44   :  { %321 = vmatmul.mubr.f32.vlgmr.msra.gmra.mxu1 %v159_v4  ;;  %2619 = vmatprep.subr.mxu0 %v148_v5 }
  0x45   :  { %240 = vmatprep.mubr.f32.mxu0 %v156_v6  ;;  %2620 = vmatpush3.msra.mxu0 %v148_v5 }
  0x46   :  { %325 = vmatprep.mubr.f32.mxu1 %v164_v7  ;;  %2621 = vmatprep.subr.mxu0 %v147_v8 }
  0x47   :  { %2622 = vmatpush3.msra.mxu0 %v147_v8 }
  0x48   :  { %326 = vmatmul.mubr.f32.gmra.mxu1 %v160_v9  ;;  %2623 = vmatprep.subr.mxu0 %v146_v10 }
  0x49   :  { %241 = vmatmul.mubr.f32.gmra.mxu0 %v152_v11  ;;  %330 = vmatprep.mubr.f32.mxu1 %v165_v14 }
  0x4a   :  { %2624 = vmatpush3.msra.mxu0 %v146_v10  ;;  %245 = vmatprep.mubr.f32.mxu0 %v157_v12 }
  0x4b   :  { %2625 = vmatprep.subr.mxu0 %v145_v13 }
  0x4c   :  { %2626 = vmatpush3.msra.mxu0 %v145_v13  ;;  %331 = vmatmul.mubr.f32.gmra.mxu1 %v161_v15 }
  0x4d   :  { %2627 = vmatprep.subr.mxu0 %v144_v16  ;;  %246 = vmatmul.mubr.f32.gmra.mxu0 %v153_v17 }
  0x4e   :  { %2628 = vmatpush3.msra.mxu0 %v144_v16  ;;  %250 = vmatprep.mubr.f32.mxu0 %v158_v18 }
  0x4f   :  { %2629 = vmatprep.subr.mxu0 %v143_v19  ;;  %335 = vmatprep.mubr.f32.mxu1 %v166_v20 }
  0x50   :  { %2630 = vmatpush3.msra.mxu0 %v143_v19  ;;  %336 = vmatmul.mubr.f32.gmra.mxu1 %v162_v21 }
  0x51   :  { %2631 = vmatprep.subr.mxu0 %v142_v22  ;;  %251 = vmatmul.mubr.f32.gmra.mxu0 %v154_v23 }
  0x52   :  { %2632 = vmatpush3.msra.mxu0 %v142_v22  ;;  %2651 = vmatprep.mubr.f32.mxu0 %v167_v24 }
  0x53   :  { %2633 = vmatprep.subr.mxu0 %v141_v25 }
  0x54   :  { %2634 = vmatpush3.msra.mxu0 %v141_v25 }
  0x55   :  { %2635 = vmatprep.subr.mxu0 %v140_v26 }
  0x56   :  { %2636 = vmatpush3.msra.mxu0 %v140_v26 }
  0x57   :  { %2637 = vmatprep.subr.mxu0 %v139_v27 }
  0x58   :  { %2638 = vmatpush3.msra.mxu0 %v139_v27 }
  0x59   :  { %2639 = vmatprep.subr.mxu0 %v138_v28 }
  0x5a   :  { %2640 = vmatpush3.msra.mxu0 %v138_v28 }
  0x5b   :  { %2641 = vmatprep.subr.mxu0 %v137_v29 }
  0x5c   :  { %2642 = vmatpush3.msra.mxu0 %v137_v29 }
  0x5d   :  { %2643 = vmatprep.subr.mxu0 %v136_v30 }
  0x5e   :  { %2644 = vmatpush3.msra.mxu0 %v136_v30 }
  0x5f   :  { %2645 = vmatprep.subr.mxu0 %v135_v31 }
  0x60   :  { %2646 = vmatpush3.msra.mxu0 %v135_v31 }
  0x61   :  { %2647 = vmatprep.subr.mxu0 %v134_v32 }
  0x62   :  { %2648 = vmatpush3.msra.mxu0 %v134_v32 }
  0x63   :  { %2649 = vmatprep.subr.mxu0 %v133_v33 }
  0x64   :  { %2650 = vmatpush3.msra.mxu0 %v133_v33 }
  0x65   :  { %2652 = vmatmul.mubr.f32.vlgmr.msra.gmra.mxu0 %v168_v34 }
  0x66   :  { %2654 = vmatprep.mubr.f32.mxu0 %v169_v35 }
  0x69   :  { %2655 = vmatmul.mubr.f32.gmra.mxu0 %v170_v36 }
 0x103   :  { %v2111_v37 = vpop.f32.mrf.mxu0 }
 0x104   :  { %v2155_v38 = vpop.f32.mrf.mxu1 }
 0x105   :  { %v2112_v39 = vpop.f32.mrf.mxu0 }
 0x106   :  { %v2156_v40 = vpop.f32.mrf.mxu1  ;;  %v2113_v55 = vadd.f32 %v2112_v39, %v2111_v37 }
 0x107   :  { %v2157_v56 = vadd.f32 %v2156_v40, %v2155_v38 }
 0x108   :  { %v2158_v42 = vpop.f32.mrf.mxu1 }
 0x109   :  { %v2114_v41 = vpop.f32.mrf.mxu0  ;;  %v323_v1 = vadd.f32 %v2157_v56, %v2113_v55 }
 0x10a   :  { %v2159_v44 = vpop.f32.mrf.mxu1 }
 0x10b   :  { %v2115_v43 = vpop.f32.mrf.mxu0  ;;  %v2160_v52 = vadd.f32 %v2159_v44, %v2158_v42 }
 0x10c   :  { %v2161_v46 = vpop.f32.mrf.mxu1  ;;  %v2116_v51 = vadd.f32 %v2115_v43, %v2114_v41 }
 0x10d   :  { %v2117_v45 = vpop.f32.mrf.mxu0 }
 0x10e   :  { %v2162_v48 = vpop.f32.mrf.mxu1  ;;  %v328_v59 = vadd.f32 %v2160_v52, %v2116_v51 }
 0x10f   :  { %v2118_v47 = vpop.f32.mrf.mxu0  ;;  %v2163_v63 = vadd.f32 %v2162_v48, %v2161_v46 }
 0x110   :  { %v2164_v50 = vpop.f32.mrf.mxu1  ;;  %v2119_v62 = vadd.f32 %v2118_v47, %v2117_v45 }
 0x111   :  { %v2120_v49 = vpop.f32.mrf.mxu0 }
 0x112   :  { %v2165_v54 = vpop.f32.mrf.mxu1  ;;  %v333_v11 = vadd.f32 %v2163_v63, %v2119_v62 }
 0x113   :  { %v2121_v53 = vpop.f32.mrf.mxu0  ;;  %v2166_v58 = vadd.f32 %v2165_v54, %v2164_v50 }
 0x114   :  { %v2122_v57 = vadd.f32 %v2121_v53, %v2120_v49 }
 0x116   :  { %v338_v6 = vadd.f32 %v2166_v58, %v2122_v57 }
 0x125   :  { %v2653_v61 = vpop.f32.mrf.mxu0 }
 0x126   :  { %v413_v0 = vadd.f32 %v2653_v61, %v328_v59 }
 0x127   :  { %v407_v3 = vpop.f32.mrf.mxu0 }
 0x128   :  { %v433_v4 = vmul.f32 %v2060_v60, %v413_v0  ;;  %v408_v5 = vadd.f32 %v407_v3, %v323_v1 }
 0x129   :  { %v2656_v7 = vpop.f32.mrf.mxu0 }
 0x12a   :  { %v443_v8 = vadd.f32 %v2061_v2, %v433_v4  ;;  %v432_v9 = vmul.f32 %v2060_v60, %v408_v5  ;;  %v423_v10 = vadd.f32 %v2656_v7, %v338_v6 }
 0x12b   :  { %v417_v12 = vpop.f32.mrf.mxu0 }
 0x12c   :  { %2845 = vtanh.f32 %v443_v8  ;;  %v442_v13 = vadd.f32 %v2061_v2, %v432_v9  ;;  %v435_v14 = vmul.f32 %v2060_v60, %v423_v10  ;;  %v418_v15 = vadd.f32 %v417_v12, %v333_v11 }
 0x12e   :  { %2847 = vtanh.f32 %v442_v13  ;;  %v445_v16 = vadd.f32 %v2061_v2, %v435_v14  ;;  %v434_v17 = vmul.f32 %v2060_v60, %v418_v15 }
 0x130   :  { %2849 = vtanh.f32 %v445_v16  ;;  %v444_v18 = vadd.f32 %v2061_v2, %v434_v17 }
 0x132   :  { %2851 = vtanh.f32 %v444_v18 }
 0x139   :  { %v2846_v19 = vpop.eup %2845 }
 0x13a   :  { %2853 = vtanh.f32 %v2846_v19 }
 0x13b   :  { %v2848_v20 = vpop.eup %2847 }
 0x13c   :  { %2855 = vtanh.f32 %v2848_v20 }
 0x13d   :  { %v2850_v21 = vpop.eup %2849 }
 0x13e   :  { %2857 = vtanh.f32 %v2850_v21 }
 0x13f   :  { %v2852_v22 = vpop.eup %2851 }
 0x140   :  { %2859 = vtanh.f32 %v2852_v22 }
 0x147   :  { %v2854_v23 = vpop.eup %2853 }
 0x148   :  { %2861 = vtanh.f32 %v2854_v23 }
 0x149   :  { %v2856_v24 = vpop.eup %2855 }
 0x14a   :  { %2863 = vtanh.f32 %v2856_v24 }
 0x14b   :  { %v2858_v25 = vpop.eup %2857 }
 0x14c   :  { %2865 = vtanh.f32 %v2858_v25 }
 0x14d   :  { %v2860_v26 = vpop.eup %2859 }
 0x14e   :  { %2867 = vtanh.f32 %v2860_v26 }
 0x155   :  { %v2862_v27 = vpop.eup %2861 }
 0x156   :  { %459 = vst [vmem:[#allocation5 + $0x10] sm:$0xff] %v2862_v27 }
 0x157   :  { %v2864_v28 = vpop.eup %2863 }
 0x158   :  { %458 = vst [vmem:[#allocation5 + $0x8] sm:$0xff] %v2864_v28 }
 0x159   :  { %v2866_v29 = vpop.eup %2865 }
 0x15a   :  { %461 = vst [vmem:[#allocation5 + $0x30] sm:$0xff] %v2866_v29 }
 0x15b   :  { %v2868_v30 = vpop.eup %2867 }
 0x15c   :  { %460 = vst [vmem:[#allocation5 + $0x28] sm:$0xff] %v2868_v30 }
 0x15d   :  { %3003 = dma.done.wait [#allocation7 + $0x1], 30720 }
 0x15e   :  { %3004 = vsyncadd [#allocation7 + $0x1], 4294936576  ;;  %v497_v31 = vld [vmem:[#allocation3 + $0xf8] sm:$0xff]  ;;  %v496_v35 = vld [vmem:[#allocation3 + $0xf0] sm:$0xff] }
 0x15f   :  { %v529_v32 = vld [vmem:[#allocation3 + $0x1f8] sm:$0xff]  ;;  %2187 = vmatprep.subr.mxu1 %v497_v31  ;;  %v528_v36 = vld [vmem:[#allocation3 + $0x1f0] sm:$0xff]  ;;  %v495_v39 = vld [vmem:[#allocation3 + $0xe8] sm:$0xff] }
 0x160   :  { %v481_v33 = vld [vmem:[#allocation3 + $0x78] sm:$0xff]  ;;  %2231 = vmatprep.subr.mxu0 %v529_v32  ;;  %v480_v37 = vld [vmem:[#allocation3 + $0x70] sm:$0xff]  ;;  %v527_v40 = vld [vmem:[#allocation3 + $0x1e8] sm:$0xff] }
 0x161   :  { %v513_v34 = vld [vmem:[#allocation3 + $0x178] sm:$0xff]  ;;  %2188 = vmatpush3.msra.mxu1 %v481_v33  ;;  %v512_v38 = vld [vmem:[#allocation3 + $0x170] sm:$0xff]  ;;  %v479_v41 = vld [vmem:[#allocation3 + $0x68] sm:$0xff] }
 0x162   :  { %2232 = vmatpush3.msra.mxu0 %v513_v34  ;;  %2189 = vmatprep.subr.mxu1 %v496_v35  ;;  %v511_v42 = vld [vmem:[#allocation3 + $0x168] sm:$0xff]  ;;  %v494_v43 = vld [vmem:[#allocation3 + $0xe0] sm:$0xff]  ;;  %v493_v47 = vld [vmem:[#allocation3 + $0xd8] sm:$0xff] }
 0x163   :  { %2233 = vmatprep.subr.mxu0 %v528_v36  ;;  %2190 = vmatpush3.msra.mxu1 %v480_v37  ;;  %v526_v44 = vld [vmem:[#allocation3 + $0x1e0] sm:$0xff]  ;;  %v525_v48 = vld [vmem:[#allocation3 + $0x1d8] sm:$0xff]  ;;  %v492_v51 = vld [vmem:[#allocation3 + $0xd0] sm:$0xff] }
 0x164   :  { %2234 = vmatpush3.msra.mxu0 %v512_v38  ;;  %2191 = vmatprep.subr.mxu1 %v495_v39  ;;  %v478_v45 = vld [vmem:[#allocation3 + $0x60] sm:$0xff]  ;;  %v477_v49 = vld [vmem:[#allocation3 + $0x58] sm:$0xff]  ;;  %v524_v52 = vld [vmem:[#allocation3 + $0x1d0] sm:$0xff] }
 0x165   :  { %2235 = vmatprep.subr.mxu0 %v527_v40  ;;  %v510_v46 = vld [vmem:[#allocation3 + $0x160] sm:$0xff]  ;;  %2192 = vmatpush3.msra.mxu1 %v479_v41  ;;  %v509_v50 = vld [vmem:[#allocation3 + $0x158] sm:$0xff]  ;;  %v476_v53 = vld [vmem:[#allocation3 + $0x50] sm:$0xff] }
 0x166   :  { %2236 = vmatpush3.msra.mxu0 %v511_v42  ;;  %2193 = vmatprep.subr.mxu1 %v494_v43  ;;  %v508_v54 = vld [vmem:[#allocation3 + $0x150] sm:$0xff]  ;;  %v491_v55 = vld [vmem:[#allocation3 + $0xc8] sm:$0xff]  ;;  %v490_v59 = vld [vmem:[#allocation3 + $0xc0] sm:$0xff] }
 0x167   :  { %2237 = vmatprep.subr.mxu0 %v526_v44  ;;  %2194 = vmatpush3.msra.mxu1 %v478_v45  ;;  %v523_v56 = vld [vmem:[#allocation3 + $0x1c8] sm:$0xff]  ;;  %v522_v60 = vld [vmem:[#allocation3 + $0x1c0] sm:$0xff]  ;;  %v489_v63 = vld [vmem:[#allocation3 + $0xb8] sm:$0xff] }
 0x168   :  { %2238 = vmatpush3.msra.mxu0 %v510_v46  ;;  %2195 = vmatprep.subr.mxu1 %v493_v47  ;;  %v475_v57 = vld [vmem:[#allocation3 + $0x48] sm:$0xff]  ;;  %v474_v61 = vld [vmem:[#allocation3 + $0x40] sm:$0xff]  ;;  %v521_v0 = vld [vmem:[#allocation3 + $0x1b8] sm:$0xff] }
 0x169   :  { %2239 = vmatprep.subr.mxu0 %v525_v48  ;;  %2196 = vmatpush3.msra.mxu1 %v477_v49  ;;  %v507_v58 = vld [vmem:[#allocation3 + $0x148] sm:$0xff]  ;;  %v506_v62 = vld [vmem:[#allocation3 + $0x140] sm:$0xff]  ;;  %v473_v1 = vld [vmem:[#allocation3 + $0x38] sm:$0xff] }
 0x16a   :  { %2240 = vmatpush3.msra.mxu0 %v509_v50  ;;  %2197 = vmatprep.subr.mxu1 %v492_v51  ;;  %v505_v2 = vld [vmem:[#allocation3 + $0x138] sm:$0xff]  ;;  %v488_v3 = vld [vmem:[#allocation3 + $0xb0] sm:$0xff]  ;;  %v487_v7 = vld [vmem:[#allocation3 + $0xa8] sm:$0xff] }
 0x16b   :  { %2241 = vmatprep.subr.mxu0 %v524_v52  ;;  %2198 = vmatpush3.msra.mxu1 %v476_v53  ;;  %v520_v4 = vld [vmem:[#allocation3 + $0x1b0] sm:$0xff]  ;;  %v519_v8 = vld [vmem:[#allocation3 + $0x1a8] sm:$0xff]  ;;  %v486_v11 = vld [vmem:[#allocation3 + $0xa0] sm:$0xff] }
 0x16c   :  { %2242 = vmatpush3.msra.mxu0 %v508_v54  ;;  %2199 = vmatprep.subr.mxu1 %v491_v55  ;;  %v472_v5 = vld [vmem:[#allocation3 + $0x30] sm:$0xff]  ;;  %v471_v9 = vld [vmem:[#allocation3 + $0x28] sm:$0xff]  ;;  %v518_v12 = vld [vmem:[#allocation3 + $0x1a0] sm:$0xff] }
 0x16d   :  { %2243 = vmatprep.subr.mxu0 %v523_v56  ;;  %2200 = vmatpush3.msra.mxu1 %v475_v57  ;;  %v504_v6 = vld [vmem:[#allocation3 + $0x130] sm:$0xff]  ;;  %v503_v10 = vld [vmem:[#allocation3 + $0x128] sm:$0xff]  ;;  %v470_v13 = vld [vmem:[#allocation3 + $0x20] sm:$0xff] }
 0x16e   :  { %2244 = vmatpush3.msra.mxu0 %v507_v58  ;;  %2201 = vmatprep.subr.mxu1 %v490_v59  ;;  %v502_v14 = vld [vmem:[#allocation3 + $0x120] sm:$0xff]  ;;  %v485_v15 = vld [vmem:[#allocation3 + $0x98] sm:$0xff]  ;;  %v484_v19 = vld [vmem:[#allocation3 + $0x90] sm:$0xff] }
 0x16f   :  { %2245 = vmatprep.subr.mxu0 %v522_v60  ;;  %2202 = vmatpush3.msra.mxu1 %v474_v61  ;;  %v517_v16 = vld [vmem:[#allocation3 + $0x198] sm:$0xff]  ;;  %v516_v20 = vld [vmem:[#allocation3 + $0x190] sm:$0xff]  ;;  %v483_v23 = vld [vmem:[#allocation3 + $0x88] sm:$0xff] }
 0x170   :  { %2246 = vmatpush3.msra.mxu0 %v506_v62  ;;  %2203 = vmatprep.subr.mxu1 %v489_v63  ;;  %v469_v17 = vld [vmem:[#allocation3 + $0x18] sm:$0xff]  ;;  %v468_v21 = vld [vmem:[#allocation3 + $0x10] sm:$0xff]  ;;  %v515_v24 = vld [vmem:[#allocation3 + $0x188] sm:$0xff] }
 0x171   :  { %2247 = vmatprep.subr.mxu0 %v521_v0  ;;  %2204 = vmatpush3.msra.mxu1 %v473_v1  ;;  %v501_v18 = vld [vmem:[#allocation3 + $0x118] sm:$0xff]  ;;  %v500_v22 = vld [vmem:[#allocation3 + $0x110] sm:$0xff]  ;;  %v467_v25 = vld [vmem:[#allocation3 + $0x8] sm:$0xff] }
 0x172   :  { %2248 = vmatpush3.msra.mxu0 %v505_v2  ;;  %2205 = vmatprep.subr.mxu1 %v488_v3  ;;  %v499_v26 = vld [vmem:[#allocation3 + $0x108] sm:$0xff]  ;;  %v482_v27 = vld [vmem:[#allocation3 + $0x80] sm:$0xff]  ;;  %v545_v35 = vld [vmem:[#allocation3 + $0x278] sm:$0xff] }
 0x173   :  { %2249 = vmatprep.subr.mxu0 %v520_v4  ;;  %2206 = vmatpush3.msra.mxu1 %v472_v5  ;;  %v514_v28 = vld [vmem:[#allocation3 + $0x180] sm:$0xff]  ;;  %v562_v32 = vld [vmem:[#allocation5 + $0x9] sm:$0xff]  ;;  %v563_v37 = vld [vmem:[#allocation5 + $0x11] sm:$0xff] }
 0x174   :  { %2250 = vmatpush3.msra.mxu0 %v504_v6  ;;  %2207 = vmatprep.subr.mxu1 %v487_v7  ;;  %v466_v29 = vld [vmem:[#allocation3] sm:$0xff]  ;;  %v558_v34 = vld [vmem:[#allocation5 + $0x8] sm:$0xff]  ;;  %v544_v38 = vld [vmem:[#allocation3 + $0x270] sm:$0xff] }
 0x175   :  { %2251 = vmatprep.subr.mxu0 %v519_v8  ;;  %2208 = vmatpush3.msra.mxu1 %v471_v9  ;;  %v554_v30 = vld [vmem:[#allocation5 + $0x7] sm:$0xff]  ;;  %v555_v36 = vld [vmem:[#allocation5 + $0xf] sm:$0xff]  ;;  %v541_v46 = vld [vmem:[#allocation3 + $0x258] sm:$0xff] }
 0x176   :  { %2252 = vmatpush3.msra.mxu0 %v503_v10  ;;  %2209 = vmatprep.subr.mxu1 %v486_v11  ;;  %v498_v31 = vld [vmem:[#allocation3 + $0x100] sm:$0xff]  ;;  %v559_v39 = vld [vmem:[#allocation5 + $0x10] sm:$0xff]  ;;  %v543_v40 = vld [vmem:[#allocation3 + $0x268] sm:$0xff] }
 0x177   :  { %2253 = vmatprep.subr.mxu0 %v518_v12  ;;  %2210 = vmatpush3.msra.mxu1 %v470_v13  ;;  %v550_v33 = vld [vmem:[#allocation5 + $0x6] sm:$0xff]  ;;  %v551_v41 = vld [vmem:[#allocation5 + $0xe] sm:$0xff]  ;;  %v537_v56 = vld [vmem:[#allocation3 + $0x238] sm:$0xff] }
 0x178   :  { %2254 = vmatpush3.msra.mxu0 %v502_v14  ;;  %2211 = vmatprep.subr.mxu1 %v485_v15  ;;  %v556_v42 = vld [vmem:[#allocation5 + $0x27] sm:$0xff]  ;;  %v557_v48 = vld [vmem:[#allocation5 + $0x2f] sm:$0xff]  ;;  %v533_v60 = vld [vmem:[#allocation3 + $0x218] sm:$0xff] }
 0x179   :  { %2255 = vmatprep.subr.mxu0 %v517_v16  ;;  %2212 = vmatpush3.msra.mxu1 %v469_v17  ;;  %v542_v43 = vld [vmem:[#allocation3 + $0x260] sm:$0xff]  ;;  %v564_v44 = vld [vmem:[#allocation5 + $0x29] sm:$0xff]  ;;  %v565_v50 = vld [vmem:[#allocation5 + $0x31] sm:$0xff] }
 0x17a   :  { %2256 = vmatpush3.msra.mxu0 %v501_v18  ;;  %2213 = vmatprep.subr.mxu1 %v484_v19  ;;  %v560_v45 = vld [vmem:[#allocation5 + $0x28] sm:$0xff]  ;;  %v540_v49 = vld [vmem:[#allocation3 + $0x250] sm:$0xff]  ;;  %v538_v55 = vld [vmem:[#allocation3 + $0x240] sm:$0xff] }
 0x17b   :  { %2257 = vmatprep.subr.mxu0 %v516_v20  ;;  %2214 = vmatpush3.msra.mxu1 %v468_v21  ;;  %v552_v47 = vld [vmem:[#allocation5 + $0x26] sm:$0xff]  ;;  %v561_v51 = vld [vmem:[#allocation5 + $0x30] sm:$0xff]  ;;  %v893_v3 = vld [vmem:[#allocation3 + $0x378] sm:$0xff] }
 0x17c   :  { %2258 = vmatpush3.msra.mxu0 %v500_v22  ;;  %2215 = vmatprep.subr.mxu1 %v483_v23  ;;  %v539_v52 = vld [vmem:[#allocation3 + $0x248] sm:$0xff]  ;;  %v536_v57 = vld [vmem:[#allocation3 + $0x230] sm:$0xff]  ;;  %v534_v59 = vld [vmem:[#allocation3 + $0x220] sm:$0xff] }
 0x17d   :  { %2259 = vmatprep.subr.mxu0 %v515_v24  ;;  %2216 = vmatpush3.msra.mxu1 %v467_v25  ;;  %v553_v53 = vld [vmem:[#allocation5 + $0x2e] sm:$0xff]  ;;  %v530_v63 = vld [vmem:[#allocation3 + $0x200] sm:$0xff]  ;;  %v877_v4 = vld [vmem:[#allocation3 + $0x2f8] sm:$0xff] }
 0x17e   :  { %2260 = vmatpush3.msra.mxu0 %v499_v26  ;;  %2217 = vmatprep.subr.mxu1 %v482_v27  ;;  %v566_v54 = vld [vmem:[#allocation5 + $0xa] sm:$0xff]  ;;  %v567_v0 = vld [vmem:[#allocation5 + $0x12] sm:$0xff]  ;;  %v890_v14 = vld [vmem:[#allocation3 + $0x360] sm:$0xff] }
 0x17f   :  { %2261 = vmatprep.subr.mxu0 %v514_v28  ;;  %2218 = vmatpush3.msra.mxu1 %v466_v29  ;;  %v535_v58 = vld [vmem:[#allocation3 + $0x228] sm:$0xff]  ;;  %v532_v61 = vld [vmem:[#allocation3 + $0x210] sm:$0xff]  ;;  %v925_v5 = vld [vmem:[#allocation3 + $0x478] sm:$0xff] }
 0x180   :  { %634 = vmatprep.mubr.f32.mxu1 %v554_v30  ;;  %2262 = vmatpush3.msra.mxu0 %v498_v31  ;;  %v531_v62 = vld [vmem:[#allocation3 + $0x208] sm:$0xff]  ;;  %v569_v2 = vld [vmem:[#allocation5 + $0x32] sm:$0xff]  ;;  %v874_v16 = vld [vmem:[#allocation3 + $0x2e0] sm:$0xff] }
 0x181   :  { %719 = vmatprep.mubr.f32.mxu0 %v562_v32  ;;  %635 = vmatmul.mubr.f32.vlgmr.msra.gmra.mxu1 %v550_v33  ;;  %v568_v1 = vld [vmem:[#allocation5 + $0x2a] sm:$0xff]  ;;  %v909_v7 = vld [vmem:[#allocation3 + $0x3f8] sm:$0xff]  ;;  %v922_v17 = vld [vmem:[#allocation3 + $0x460] sm:$0xff] }
 0x182   :  { %720 = vmatmul.mubr.f32.vlgmr.msra.gmra.mxu0 %v558_v34  ;;  %2657 = vmatprep.subr.mxu1 %v545_v35  ;;  %v892_v6 = vld [vmem:[#allocation3 + $0x370] sm:$0xff]  ;;  %v891_v10 = vld [vmem:[#allocation3 + $0x368] sm:$0xff]  ;;  %v889_v18 = vld [vmem:[#allocation3 + $0x358] sm:$0xff] }
 0x183   :  { %639 = vmatprep.mubr.f32.mxu1 %v555_v36  ;;  %2658 = vmatpush3.msra.mxu1 %v545_v35  ;;  %v876_v8 = vld [vmem:[#allocation3 + $0x2f0] sm:$0xff]  ;;  %v875_v12 = vld [vmem:[#allocation3 + $0x2e8] sm:$0xff]  ;;  %v906_v19 = vld [vmem:[#allocation3 + $0x3e0] sm:$0xff] }
 0x184   :  { %724 = vmatprep.mubr.f32.mxu0 %v563_v37  ;;  %2659 = vmatprep.subr.mxu1 %v544_v38  ;;  %v924_v9 = vld [vmem:[#allocation3 + $0x470] sm:$0xff]  ;;  %v923_v13 = vld [vmem:[#allocation3 + $0x468] sm:$0xff]  ;;  %v873_v20 = vld [vmem:[#allocation3 + $0x2d8] sm:$0xff] }
 0x185   :  { %2660 = vmatpush3.msra.mxu1 %v544_v38  ;;  %2295 = vmatprep.subr.mxu0 %v893_v3  ;;  %v908_v11 = vld [vmem:[#allocation3 + $0x3f0] sm:$0xff]  ;;  %v907_v15 = vld [vmem:[#allocation3 + $0x3e8] sm:$0xff]  ;;  %v921_v21 = vld [vmem:[#allocation3 + $0x458] sm:$0xff] }
 0x186   :  { %725 = vmatmul.mubr.f32.gmra.mxu0 %v559_v39  ;;  %2661 = vmatprep.subr.mxu1 %v543_v40  ;;  %v888_v22 = vld [vmem:[#allocation3 + $0x350] sm:$0xff]  ;;  %v905_v23 = vld [vmem:[#allocation3 + $0x3d8] sm:$0xff]  ;;  %v887_v26 = vld [vmem:[#allocation3 + $0x348] sm:$0xff] }
 0x187   :  { %640 = vmatmul.mubr.f32.gmra.mxu1 %v551_v41  ;;  %729 = vmatprep.mubr.f32.mxu0 %v564_v44  ;;  %v872_v24 = vld [vmem:[#allocation3 + $0x2d0] sm:$0xff]  ;;  %v871_v28 = vld [vmem:[#allocation3 + $0x2c8] sm:$0xff]  ;;  %v886_v30 = vld [vmem:[#allocation3 + $0x340] sm:$0xff] }
 0x188   :  { %2662 = vmatpush3.msra.mxu1 %v543_v40  ;;  %644 = vmatprep.mubr.f32.mxu1 %v556_v42  ;;  %v920_v25 = vld [vmem:[#allocation3 + $0x450] sm:$0xff]  ;;  %v919_v29 = vld [vmem:[#allocation3 + $0x448] sm:$0xff]  ;;  %v870_v32 = vld [vmem:[#allocation3 + $0x2c0] sm:$0xff] }
 0x189   :  { %2663 = vmatprep.subr.mxu1 %v542_v43  ;;  %2296 = vmatpush3.msra.mxu0 %v877_v4  ;;  %v904_v27 = vld [vmem:[#allocation3 + $0x3d0] sm:$0xff]  ;;  %v903_v31 = vld [vmem:[#allocation3 + $0x3c8] sm:$0xff]  ;;  %v918_v33 = vld [vmem:[#allocation3 + $0x440] sm:$0xff] }
 0x18a   :  { %2664 = vmatpush3.msra.mxu1 %v542_v43  ;;  %730 = vmatmul.mubr.f32.gmra.mxu0 %v560_v45  ;;  %v885_v34 = vld [vmem:[#allocation3 + $0x338] sm:$0xff]  ;;  %v902_v35 = vld [vmem:[#allocation3 + $0x3c0] sm:$0xff]  ;;  %v884_v38 = vld [vmem:[#allocation3 + $0x330] sm:$0xff] }
 0x18b   :  { %2665 = vmatprep.subr.mxu1 %v541_v46  ;;  %645 = vmatmul.mubr.f32.gmra.mxu1 %v552_v47  ;;  %v869_v36 = vld [vmem:[#allocation3 + $0x2b8] sm:$0xff]  ;;  %v868_v40 = vld [vmem:[#allocation3 + $0x2b0] sm:$0xff]  ;;  %v883_v42 = vld [vmem:[#allocation3 + $0x328] sm:$0xff] }
 0x18c   :  { %2666 = vmatpush3.msra.mxu1 %v541_v46  ;;  %649 = vmatprep.mubr.f32.mxu1 %v557_v48  ;;  %v917_v37 = vld [vmem:[#allocation3 + $0x438] sm:$0xff]  ;;  %v916_v41 = vld [vmem:[#allocation3 + $0x430] sm:$0xff]  ;;  %v867_v44 = vld [vmem:[#allocation3 + $0x2a8] sm:$0xff] }
 0x18d   :  { %2667 = vmatprep.subr.mxu1 %v540_v49  ;;  %734 = vmatprep.mubr.f32.mxu0 %v565_v50  ;;  %v901_v39 = vld [vmem:[#allocation3 + $0x3b8] sm:$0xff]  ;;  %v900_v43 = vld [vmem:[#allocation3 + $0x3b0] sm:$0xff]  ;;  %v915_v45 = vld [vmem:[#allocation3 + $0x428] sm:$0xff] }
 0x18e   :  { %2668 = vmatpush3.msra.mxu1 %v540_v49  ;;  %735 = vmatmul.mubr.f32.gmra.mxu0 %v561_v51  ;;  %v882_v46 = vld [vmem:[#allocation3 + $0x320] sm:$0xff]  ;;  %v899_v47 = vld [vmem:[#allocation3 + $0x3a8] sm:$0xff]  ;;  %v881_v50 = vld [vmem:[#allocation3 + $0x318] sm:$0xff] }
 0x18f   :  { %2669 = vmatprep.subr.mxu1 %v539_v52  ;;  %650 = vmatmul.mubr.f32.gmra.mxu1 %v553_v53  ;;  %v866_v48 = vld [vmem:[#allocation3 + $0x2a0] sm:$0xff]  ;;  %v913_v53 = vld [vmem:[#allocation3 + $0x418] sm:$0xff] }
 0x190   :  { %2670 = vmatpush3.msra.mxu1 %v539_v52  ;;  %2689 = vmatprep.mubr.f32.mxu1 %v566_v54  ;;  %v914_v49 = vld [vmem:[#allocation3 + $0x420] sm:$0xff]  ;;  %v865_v52 = vld [vmem:[#allocation3 + $0x298] sm:$0xff]  ;;  %v880_v54 = vld [vmem:[#allocation3 + $0x310] sm:$0xff] }
 0x191   :  { %2671 = vmatprep.subr.mxu1 %v538_v55  ;;  %2297 = vmatprep.subr.mxu0 %v892_v6  ;;  %v898_v51 = vld [vmem:[#allocation3 + $0x3a0] sm:$0xff]  ;;  %v3131_v3 = vld [vmem:[#allocation3 + $0x4f8] sm:$0xff] }
 0x192   :  { %2672 = vmatpush3.msra.mxu1 %v538_v55  ;;  %2298 = vmatpush3.msra.mxu0 %v876_v8  ;;  %v897_v55 = vld [vmem:[#allocation3 + $0x398] sm:$0xff] }
 0x193   :  { %2673 = vmatprep.subr.mxu1 %v537_v56  ;;  %2299 = vmatprep.subr.mxu0 %v891_v10 }
 0x194   :  { %2674 = vmatpush3.msra.mxu1 %v537_v56  ;;  %2300 = vmatpush3.msra.mxu0 %v875_v12  ;;  %v864_v56 = vld [vmem:[#allocation3 + $0x290] sm:$0xff] }
 0x195   :  { %2675 = vmatprep.subr.mxu1 %v536_v57  ;;  %2301 = vmatprep.subr.mxu0 %v890_v14 }
 0x196   :  { %2676 = vmatpush3.msra.mxu1 %v536_v57  ;;  %2302 = vmatpush3.msra.mxu0 %v874_v16  ;;  %v912_v57 = vld [vmem:[#allocation3 + $0x410] sm:$0xff] }
 0x197   :  { %2677 = vmatprep.subr.mxu1 %v535_v58  ;;  %2303 = vmatprep.subr.mxu0 %v889_v18 }
 0x198   :  { %2678 = vmatpush3.msra.mxu1 %v535_v58  ;;  %2304 = vmatpush3.msra.mxu0 %v873_v20  ;;  %v879_v58 = vld [vmem:[#allocation3 + $0x308] sm:$0xff] }
 0x199   :  { %2679 = vmatprep.subr.mxu1 %v534_v59  ;;  %2305 = vmatprep.subr.mxu0 %v888_v22 }
 0x19a   :  { %2680 = vmatpush3.msra.mxu1 %v534_v59  ;;  %2306 = vmatpush3.msra.mxu0 %v872_v24  ;;  %v896_v59 = vld [vmem:[#allocation3 + $0x390] sm:$0xff] }
 0x19b   :  { %2681 = vmatprep.subr.mxu1 %v533_v60  ;;  %2307 = vmatprep.subr.mxu0 %v887_v26 }
 0x19c   :  { %2682 = vmatpush3.msra.mxu1 %v533_v60  ;;  %2308 = vmatpush3.msra.mxu0 %v871_v28  ;;  %v863_v60 = vld [vmem:[#allocation3 + $0x288] sm:$0xff] }
 0x19d   :  { %2683 = vmatprep.subr.mxu1 %v532_v61  ;;  %2309 = vmatprep.subr.mxu0 %v886_v30 }
 0x19e   :  { %2684 = vmatpush3.msra.mxu1 %v532_v61  ;;  %2310 = vmatpush3.msra.mxu0 %v870_v32  ;;  %v911_v61 = vld [vmem:[#allocation3 + $0x408] sm:$0xff] }
 0x19f   :  { %2685 = vmatprep.subr.mxu1 %v531_v62  ;;  %2311 = vmatprep.subr.mxu0 %v885_v34 }
 0x1a0   :  { %2686 = vmatpush3.msra.mxu1 %v531_v62  ;;  %2312 = vmatpush3.msra.mxu0 %v869_v36  ;;  %v878_v62 = vld [vmem:[#allocation3 + $0x300] sm:$0xff] }
 0x1a1   :  { %2687 = vmatprep.subr.mxu1 %v530_v63  ;;  %2313 = vmatprep.subr.mxu0 %v884_v38 }
 0x1a2   :  { %2688 = vmatpush3.msra.mxu1 %v530_v63  ;;  %2314 = vmatpush3.msra.mxu0 %v868_v40  ;;  %v895_v63 = vld [vmem:[#allocation3 + $0x388] sm:$0xff] }
 0x1a3   :  { %2690 = vmatmul.mubr.f32.vlgmr.msra.gmra.mxu1 %v567_v0  ;;  %2339 = vmatprep.subr.mxu1 %v925_v5  ;;  %v862_v0 = vld [vmem:[#allocation3 + $0x280] sm:$0xff] }
 0x1a4   :  { %2692 = vmatprep.mubr.f32.mxu1 %v568_v1  ;;  %2340 = vmatpush3.msra.mxu1 %v909_v7  ;;  %v910_v1 = vld [vmem:[#allocation3 + $0x400] sm:$0xff] }
 0x1a5   :  { %2341 = vmatprep.subr.mxu1 %v924_v9  ;;  %2315 = vmatprep.subr.mxu0 %v883_v42 }
 0x1a6   :  { %2342 = vmatpush3.msra.mxu1 %v908_v11  ;;  %2316 = vmatpush3.msra.mxu0 %v867_v44 }
 0x1a7   :  { %2693 = vmatmul.mubr.f32.gmra.mxu1 %v569_v2  ;;  %2343 = vmatprep.subr.mxu1 %v923_v13  ;;  %v894_v2 = vld [vmem:[#allocation3 + $0x380] sm:$0xff] }
 0x1a8   :  { %2344 = vmatpush3.msra.mxu1 %v907_v15  ;;  %2317 = vmatprep.subr.mxu0 %v882_v46 }
 0x1a9   :  { %2345 = vmatprep.subr.mxu1 %v922_v17  ;;  %2318 = vmatpush3.msra.mxu0 %v866_v48 }
 0x1aa   :  { %2346 = vmatpush3.msra.mxu1 %v906_v19  ;;  %2319 = vmatprep.subr.mxu0 %v881_v50 }
 0x1ab   :  { %2347 = vmatprep.subr.mxu1 %v921_v21  ;;  %2320 = vmatpush3.msra.mxu0 %v865_v52 }
 0x1ac   :  { %2348 = vmatpush3.msra.mxu1 %v905_v23  ;;  %2321 = vmatprep.subr.mxu0 %v880_v54 }
 0x1ad   :  { %2349 = vmatprep.subr.mxu1 %v920_v25  ;;  %2322 = vmatpush3.msra.mxu0 %v864_v56 }
 0x1ae   :  { %2350 = vmatpush3.msra.mxu1 %v904_v27  ;;  %2323 = vmatprep.subr.mxu0 %v879_v58  ;;  %v2064_v27 = vld [vmem:[%s3177_s4 + $0x1] ss:$0 sm:$0xff] }
 0x1af   :  { %2351 = vmatprep.subr.mxu1 %v919_v29  ;;  %2324 = vmatpush3.msra.mxu0 %v863_v60 }
 0x1b0   :  { %2352 = vmatpush3.msra.mxu1 %v903_v31  ;;  %2325 = vmatprep.subr.mxu0 %v878_v62 }
 0x1b1   :  { %2353 = vmatprep.subr.mxu1 %v918_v33  ;;  %2326 = vmatpush3.msra.mxu0 %v862_v0  ;;  %v2065_v33 = vld [vmem:[%s3178_s5 + $0x1] ss:$0 sm:$0xff] }
 0x1b2   :  { %2354 = vmatpush3.msra.mxu1 %v902_v35  ;;  %2695 = vmatprep.subr.mxu0 %v3131_v3 }
 0x1b3   :  { %2355 = vmatprep.subr.mxu1 %v917_v37 }
 0x1b4   :  { %2356 = vmatpush3.msra.mxu1 %v901_v39 }
 0x1b5   :  { %2357 = vmatprep.subr.mxu1 %v916_v41 }
 0x1b6   :  { %2358 = vmatpush3.msra.mxu1 %v900_v43 }
 0x1b7   :  { %2359 = vmatprep.subr.mxu1 %v915_v45 }
 0x1b8   :  { %2360 = vmatpush3.msra.mxu1 %v899_v47 }
 0x1b9   :  { %2361 = vmatprep.subr.mxu1 %v914_v49 }
 0x1ba   :  { %2362 = vmatpush3.msra.mxu1 %v898_v51 }
 0x1bb   :  { %2363 = vmatprep.subr.mxu1 %v913_v53 }
 0x1bc   :  { %2364 = vmatpush3.msra.mxu1 %v897_v55 }
 0x1bd   :  { %2365 = vmatprep.subr.mxu1 %v912_v57 }
 0x1be   :  { %2366 = vmatpush3.msra.mxu1 %v896_v59 }
 0x1bf   :  { %2367 = vmatprep.subr.mxu1 %v911_v61 }
 0x1c0   :  { %2368 = vmatpush3.msra.mxu1 %v895_v63 }
 0x1c1   :  { %2369 = vmatprep.subr.mxu1 %v910_v1  ;;  %v940_v1 = vld [vmem:[#allocation3 + $0x4f0] sm:$0xff] }
 0x1c2   :  { %2370 = vmatpush3.msra.mxu1 %v894_v2 }
 0x241   :  { %v2219_v4 = vpop.f32.mrf.mxu1 }
 0x242   :  { %v2263_v5 = vpop.f32.mrf.mxu0 }
 0x243   :  { %v2220_v6 = vpop.f32.mrf.mxu1 }
 0x244   :  { %v2264_v7 = vpop.f32.mrf.mxu0  ;;  %v2221_v22 = vadd.f32 %v2220_v6, %v2219_v4 }
 0x245   :  { %v2265_v23 = vadd.f32 %v2264_v7, %v2263_v5  ;;  %v939_v5 = vld [vmem:[#allocation3 + $0x4e8] sm:$0xff]  ;;  %v938_v7 = vld [vmem:[#allocation3 + $0x4e0] sm:$0xff] }
 0x246   :  { %v2266_v9 = vpop.f32.mrf.mxu0 }
 0x247   :  { %v2222_v8 = vpop.f32.mrf.mxu1  ;;  %v722_v32 = vadd.f32 %v2265_v23, %v2221_v22  ;;  %v929_v22 = vld [vmem:[#allocation3 + $0x498] sm:$0xff]  ;;  %v928_v23 = vld [vmem:[#allocation3 + $0x490] sm:$0xff] }
 0x248   :  { %v2267_v11 = vpop.f32.mrf.mxu0 }
 0x249   :  { %v2223_v10 = vpop.f32.mrf.mxu1  ;;  %v2268_v19 = vadd.f32 %v2267_v11, %v2266_v9  ;;  %v936_v11 = vld [vmem:[#allocation3 + $0x4d0] sm:$0xff] }
 0x24a   :  { %v2269_v13 = vpop.f32.mrf.mxu0  ;;  %v2224_v18 = vadd.f32 %v2223_v10, %v2222_v8  ;;  %v937_v10 = vld [vmem:[#allocation3 + $0x4d8] sm:$0xff] }
 0x24b   :  { %v2225_v12 = vpop.f32.mrf.mxu1 }
 0x24c   :  { %v2270_v15 = vpop.f32.mrf.mxu0  ;;  %v727_v26 = vadd.f32 %v2268_v19, %v2224_v18  ;;  %v933_v18 = vld [vmem:[#allocation3 + $0x4b8] sm:$0xff]  ;;  %v932_v19 = vld [vmem:[#allocation3 + $0x4b0] sm:$0xff] }
 0x24d   :  { %v2226_v14 = vpop.f32.mrf.mxu1  ;;  %v2271_v30 = vadd.f32 %v2270_v15, %v2269_v13 }
 0x24e   :  { %v2272_v17 = vpop.f32.mrf.mxu0  ;;  %v2227_v29 = vadd.f32 %v2226_v14, %v2225_v12  ;;  %v935_v14 = vld [vmem:[#allocation3 + $0x4c8] sm:$0xff] }
 0x24f   :  { %v2228_v16 = vpop.f32.mrf.mxu1 }
 0x250   :  { %v2273_v21 = vpop.f32.mrf.mxu0  ;;  %v732_v42 = vadd.f32 %v2271_v30, %v2227_v29  ;;  %v1289_v29 = vld [vmem:[#allocation3 + $0x5f8] sm:$0xff] }
 0x251   :  { %v2229_v20 = vpop.f32.mrf.mxu1  ;;  %v2274_v25 = vadd.f32 %v2273_v21, %v2272_v17  ;;  %v930_v21 = vld [vmem:[#allocation3 + $0x4a0] sm:$0xff]  ;;  %2403 = vmatprep.subr.mxu1 %v1289_v29  ;;  %v1273_v30 = vld [vmem:[#allocation3 + $0x578] sm:$0xff] }
 0x252   :  { %v2230_v24 = vadd.f32 %v2229_v20, %v2228_v16  ;;  %v934_v16 = vld [vmem:[#allocation3 + $0x4c0] sm:$0xff]  ;;  %v931_v20 = vld [vmem:[#allocation3 + $0x4a8] sm:$0xff]  ;;  %v3141_v29 = vld [vmem:[#allocation3 + $0x778] sm:$0xff] }
 0x254   :  { %v737_v37 = vadd.f32 %v2274_v25, %v2230_v24  ;;  %v927_v24 = vld [vmem:[#allocation3 + $0x488] sm:$0xff]  ;;  %v926_v25 = vld [vmem:[#allocation3 + $0x480] sm:$0xff] }
 0x263   :  { %v2691_v28 = vpop.f32.mrf.mxu1 }
 0x264   :  { %v812_v31 = vadd.f32 %v2691_v28, %v727_v26 }
 0x265   :  { %v806_v34 = vpop.f32.mrf.mxu1 }
 0x266   :  { %v832_v35 = vmul.f32 %v2064_v27, %v812_v31  ;;  %v807_v36 = vadd.f32 %v806_v34, %v722_v32  ;;  %v1321_v31 = vld [vmem:[#allocation3 + $0x6f8] sm:$0xff]  ;;  %v1288_v32 = vld [vmem:[#allocation3 + $0x5f0] sm:$0xff] }
 0x267   :  { %v2694_v38 = vpop.f32.mrf.mxu1  ;;  %v1272_v34 = vld [vmem:[#allocation3 + $0x570] sm:$0xff] }
 0x268   :  { %v842_v39 = vadd.f32 %v2065_v33, %v832_v35  ;;  %v831_v40 = vmul.f32 %v2064_v27, %v807_v36  ;;  %v822_v41 = vadd.f32 %v2694_v38, %v737_v37  ;;  %v1320_v35 = vld [vmem:[#allocation3 + $0x6f0] sm:$0xff]  ;;  %v1287_v36 = vld [vmem:[#allocation3 + $0x5e8] sm:$0xff] }
 0x269   :  { %v816_v43 = vpop.f32.mrf.mxu1  ;;  %v1304_v37 = vld [vmem:[#allocation3 + $0x670] sm:$0xff]  ;;  %v1271_v38 = vld [vmem:[#allocation3 + $0x568] sm:$0xff] }
 0x26a   :  { %2869 = vtanh.f32 %v842_v39  ;;  %v841_v44 = vadd.f32 %v2065_v33, %v831_v40  ;;  %v834_v45 = vmul.f32 %v2064_v27, %v822_v41  ;;  %v817_v46 = vadd.f32 %v816_v43, %v732_v42  ;;  %v1319_v39 = vld [vmem:[#allocation3 + $0x6e8] sm:$0xff]  ;;  %v1286_v40 = vld [vmem:[#allocation3 + $0x5e0] sm:$0xff] }
 0x26b   :  { %v1303_v41 = vld [vmem:[#allocation3 + $0x668] sm:$0xff]  ;;  %v1270_v42 = vld [vmem:[#allocation3 + $0x560] sm:$0xff] }
 0x26c   :  { %2871 = vtanh.f32 %v841_v44  ;;  %v844_v47 = vadd.f32 %v2065_v33, %v834_v45  ;;  %v833_v48 = vmul.f32 %v2064_v27, %v817_v46  ;;  %v1318_v43 = vld [vmem:[#allocation3 + $0x6e0] sm:$0xff]  ;;  %v1285_v44 = vld [vmem:[#allocation3 + $0x5d8] sm:$0xff] }
 0x26d   :  { %v1302_v45 = vld [vmem:[#allocation3 + $0x660] sm:$0xff]  ;;  %v1269_v46 = vld [vmem:[#allocation3 + $0x558] sm:$0xff] }
 0x26e   :  { %2873 = vtanh.f32 %v844_v47  ;;  %v843_v49 = vadd.f32 %v2065_v33, %v833_v48  ;;  %v1305_v33 = vld [vmem:[#allocation3 + $0x678] sm:$0xff]  ;;  %v1284_v48 = vld [vmem:[#allocation3 + $0x5d0] sm:$0xff] }
 0x26f   :  { %v1317_v47 = vld [vmem:[#allocation3 + $0x6d8] sm:$0xff] }
 0x270   :  { %2875 = vtanh.f32 %v843_v49  ;;  %v1301_v49 = vld [vmem:[#allocation3 + $0x658] sm:$0xff] }
 0x277   :  { %v2870_v50 = vpop.eup %2869 }
 0x278   :  { %2877 = vtanh.f32 %v2870_v50  ;;  %v1268_v50 = vld [vmem:[#allocation3 + $0x550] sm:$0xff] }
 0x279   :  { %v2872_v51 = vpop.eup %2871 }
 0x27a   :  { %2879 = vtanh.f32 %v2872_v51  ;;  %v1316_v51 = vld [vmem:[#allocation3 + $0x6d0] sm:$0xff] }
 0x27b   :  { %v2874_v52 = vpop.eup %2873 }
 0x27c   :  { %2881 = vtanh.f32 %v2874_v52  ;;  %v1283_v52 = vld [vmem:[#allocation3 + $0x5c8] sm:$0xff] }
 0x27d   :  { %v2876_v53 = vpop.eup %2875 }
 0x27e   :  { %2883 = vtanh.f32 %v2876_v53  ;;  %v1300_v53 = vld [vmem:[#allocation3 + $0x650] sm:$0xff] }
 0x285   :  { %v2878_v54 = vpop.eup %2877 }
 0x286   :  { %2885 = vtanh.f32 %v2878_v54  ;;  %v1267_v54 = vld [vmem:[#allocation3 + $0x548] sm:$0xff] }
 0x287   :  { %v2880_v55 = vpop.eup %2879 }
 0x288   :  { %2887 = vtanh.f32 %v2880_v55  ;;  %v1315_v55 = vld [vmem:[#allocation3 + $0x6c8] sm:$0xff] }
 0x289   :  { %v2882_v56 = vpop.eup %2881 }
 0x28a   :  { %2889 = vtanh.f32 %v2882_v56  ;;  %v1282_v56 = vld [vmem:[#allocation3 + $0x5c0] sm:$0xff] }
 0x28b   :  { %v2884_v57 = vpop.eup %2883 }
 0x28c   :  { %2891 = vtanh.f32 %v2884_v57  ;;  %v1299_v57 = vld [vmem:[#allocation3 + $0x648] sm:$0xff] }
 0x293   :  { %v2886_v58 = vpop.eup %2885 }
 0x294   :  { %858 = vst [vmem:[#allocation6 + $0x10] sm:$0xff] %v2886_v58 }
 0x295   :  { %v2888_v59 = vpop.eup %2887 }
 0x296   :  { %857 = vst [vmem:[#allocation6 + $0x8] sm:$0xff] %v2888_v59 }
 0x297   :  { %v2890_v60 = vpop.eup %2889 }
 0x298   :  { %860 = vst [vmem:[#allocation6 + $0x30] sm:$0xff] %v2890_v60 }
 0x299   :  { %v2892_v61 = vpop.eup %2891 }
 0x29a   :  { %859 = vst [vmem:[#allocation6 + $0x28] sm:$0xff] %v2892_v61 }
 0x29b   :  { %v959_v4 = vld [vmem:[#allocation6 + $0x11] sm:$0xff] }
 0x29c   :  { %v963_v26 = vld [vmem:[#allocation6 + $0x12] sm:$0xff] }
 0x29d   :  { %v950_v62 = vld [vmem:[#allocation6 + $0x7] sm:$0xff]  ;;  %v951_v2 = vld [vmem:[#allocation6 + $0xf] sm:$0xff] }
 0x29e   :  { %v958_v63 = vld [vmem:[#allocation6 + $0x9] sm:$0xff]  ;;  %1030 = vmatprep.mubr.f32.mxu0 %v950_v62  ;;  %v1265_v62 = vld [vmem:[#allocation3 + $0x538] sm:$0xff] }
 0x29f   :  { %v946_v0 = vld [vmem:[#allocation6 + $0x6] sm:$0xff]  ;;  %1115 = vmatprep.mubr.f32.mxu1 %v958_v63  ;;  %v947_v6 = vld [vmem:[#allocation6 + $0xe] sm:$0xff]  ;;  %v1313_v63 = vld [vmem:[#allocation3 + $0x6b8] sm:$0xff] }
 0x2a0   :  { %1031 = vmatmul.mubr.f32.vlgmr.msra.gmra.mxu0 %v946_v0  ;;  %1116 = vmatmul.mubr.f32.vlgmr.msra.gmra.mxu1 %v2888_v59  ;;  %v961_v13 = vld [vmem:[#allocation6 + $0x31] sm:$0xff]  ;;  %v1314_v59 = vld [vmem:[#allocation3 + $0x6c0] sm:$0xff] }
 0x2a1   :  { %2696 = vmatpush3.msra.mxu0 %v3131_v3  ;;  %1035 = vmatprep.mubr.f32.mxu0 %v951_v2  ;;  %v952_v8 = vld [vmem:[#allocation6 + $0x27] sm:$0xff]  ;;  %v953_v12 = vld [vmem:[#allocation6 + $0x2f] sm:$0xff] }
 0x2a2   :  { %1120 = vmatprep.mubr.f32.mxu1 %v959_v4  ;;  %2697 = vmatprep.subr.mxu0 %v940_v1  ;;  %v960_v9 = vld [vmem:[#allocation6 + $0x29] sm:$0xff]  ;;  %v965_v28 = vld [vmem:[#allocation6 + $0x32] sm:$0xff] }
 0x2a3   :  { %2698 = vmatpush3.msra.mxu0 %v940_v1  ;;  %v948_v3 = vld [vmem:[#allocation6 + $0x26] sm:$0xff]  ;;  %v949_v15 = vld [vmem:[#allocation6 + $0x2e] sm:$0xff]  ;;  %2404 = vmatpush3.msra.mxu1 %v1273_v30  ;;  %v1297_v1 = vld [vmem:[#allocation3 + $0x638] sm:$0xff] }
 0x2a4   :  { %2699 = vmatprep.subr.mxu0 %v939_v5  ;;  %1036 = vmatmul.mubr.f32.gmra.mxu0 %v947_v6  ;;  %v962_v17 = vld [vmem:[#allocation6 + $0xa] sm:$0xff] }
 0x2a5   :  { %1121 = vmatmul.mubr.f32.gmra.mxu1 %v2886_v58  ;;  %2700 = vmatpush3.msra.mxu0 %v939_v5  ;;  %v964_v27 = vld [vmem:[#allocation6 + $0x2a] sm:$0xff]  ;;  %v1266_v58 = vld [vmem:[#allocation3 + $0x540] sm:$0xff] }
 0x2a6   :  { %1040 = vmatprep.mubr.f32.mxu0 %v952_v8  ;;  %1125 = vmatprep.mubr.f32.mxu1 %v960_v9  ;;  %v1280_v0 = vld [vmem:[#allocation3 + $0x5b0] sm:$0xff]  ;;  %v1279_v5 = vld [vmem:[#allocation3 + $0x5a8] sm:$0xff]  ;;  %v1278_v9 = vld [vmem:[#allocation3 + $0x5a0] sm:$0xff] }
 0x2a7   :  { %2701 = vmatprep.subr.mxu0 %v938_v7  ;;  %2405 = vmatprep.subr.mxu1 %v1288_v32  ;;  %v1264_v2 = vld [vmem:[#allocation3 + $0x530] sm:$0xff]  ;;  %v1311_v8 = vld [vmem:[#allocation3 + $0x6a8] sm:$0xff] }
 0x2a8   :  { %2702 = vmatpush3.msra.mxu0 %v938_v7  ;;  %2406 = vmatpush3.msra.mxu1 %v1272_v34  ;;  %v1312_v4 = vld [vmem:[#allocation3 + $0x6b0] sm:$0xff]  ;;  %v1263_v7 = vld [vmem:[#allocation3 + $0x528] sm:$0xff] }
 0x2a9   :  { %2703 = vmatprep.subr.mxu0 %v937_v10  ;;  %1041 = vmatmul.mubr.f32.gmra.mxu0 %v948_v3  ;;  %v1296_v6 = vld [vmem:[#allocation3 + $0x630] sm:$0xff]  ;;  %v1262_v3 = vld [vmem:[#allocation3 + $0x520] sm:$0xff] }
 0x2aa   :  { %1126 = vmatmul.mubr.f32.gmra.mxu1 %v2892_v61  ;;  %2704 = vmatpush3.msra.mxu0 %v937_v10  ;;  %v1298_v61 = vld [vmem:[#allocation3 + $0x640] sm:$0xff]  ;;  %v1295_v10 = vld [vmem:[#allocation3 + $0x628] sm:$0xff] }
 0x2ab   :  { %1045 = vmatprep.mubr.f32.mxu0 %v953_v12  ;;  %1130 = vmatprep.mubr.f32.mxu1 %v961_v13  ;;  %v1277_v12 = vld [vmem:[#allocation3 + $0x598] sm:$0xff]  ;;  %v1294_v13 = vld [vmem:[#allocation3 + $0x620] sm:$0xff] }
 0x2ac   :  { %2705 = vmatprep.subr.mxu0 %v936_v11  ;;  %2407 = vmatprep.subr.mxu1 %v1287_v36 }
 0x2ad   :  { %2706 = vmatpush3.msra.mxu0 %v936_v11  ;;  %2408 = vmatpush3.msra.mxu1 %v1271_v38  ;;  %v1310_v11 = vld [vmem:[#allocation3 + $0x6a0] sm:$0xff] }
 0x2ae   :  { %2707 = vmatprep.subr.mxu0 %v935_v14  ;;  %1046 = vmatmul.mubr.f32.gmra.mxu0 %v949_v15  ;;  %v1309_v15 = vld [vmem:[#allocation3 + $0x698] sm:$0xff] }
 0x2af   :  { %1131 = vmatmul.mubr.f32.gmra.mxu1 %v2890_v60  ;;  %2708 = vmatpush3.msra.mxu0 %v935_v14  ;;  %v1281_v60 = vld [vmem:[#allocation3 + $0x5b8] sm:$0xff] }
 0x2b0   :  { %2709 = vmatprep.subr.mxu0 %v934_v16  ;;  %2727 = vmatprep.mubr.f32.mxu0 %v962_v17  ;;  %v1261_v14 = vld [vmem:[#allocation3 + $0x518] sm:$0xff] }
 0x2b1   :  { %2710 = vmatpush3.msra.mxu0 %v934_v16  ;;  %2409 = vmatprep.subr.mxu1 %v1286_v40  ;;  %v1276_v16 = vld [vmem:[#allocation3 + $0x590] sm:$0xff]  ;;  %v1293_v17 = vld [vmem:[#allocation3 + $0x618] sm:$0xff] }
 0x2b2   :  { %2711 = vmatprep.subr.mxu0 %v933_v18  ;;  %2410 = vmatpush3.msra.mxu1 %v1270_v42 }
 0x2b3   :  { %2712 = vmatpush3.msra.mxu0 %v933_v18  ;;  %2411 = vmatprep.subr.mxu1 %v1285_v44  ;;  %v1260_v18 = vld [vmem:[#allocation3 + $0x510] sm:$0xff] }
 0x2b4   :  { %2713 = vmatprep.subr.mxu0 %v932_v19  ;;  %2412 = vmatpush3.msra.mxu1 %v1269_v46 }
 0x2b5   :  { %2714 = vmatpush3.msra.mxu0 %v932_v19  ;;  %2413 = vmatprep.subr.mxu1 %v1284_v48  ;;  %v1308_v19 = vld [vmem:[#allocation3 + $0x690] sm:$0xff] }
 0x2b6   :  { %2715 = vmatprep.subr.mxu0 %v931_v20  ;;  %2414 = vmatpush3.msra.mxu1 %v1268_v50 }
 0x2b7   :  { %2716 = vmatpush3.msra.mxu0 %v931_v20  ;;  %2415 = vmatprep.subr.mxu1 %v1283_v52  ;;  %v1275_v20 = vld [vmem:[#allocation3 + $0x588] sm:$0xff] }
 0x2b8   :  { %2717 = vmatprep.subr.mxu0 %v930_v21  ;;  %2416 = vmatpush3.msra.mxu1 %v1267_v54 }
 0x2b9   :  { %2718 = vmatpush3.msra.mxu0 %v930_v21  ;;  %2417 = vmatprep.subr.mxu1 %v1282_v56  ;;  %v1292_v21 = vld [vmem:[#allocation3 + $0x610] sm:$0xff] }
 0x2ba   :  { %2719 = vmatprep.subr.mxu0 %v929_v22  ;;  %2418 = vmatpush3.msra.mxu1 %v1266_v58 }
 0x2bb   :  { %2720 = vmatpush3.msra.mxu0 %v929_v22  ;;  %2419 = vmatprep.subr.mxu1 %v1281_v60  ;;  %v1259_v22 = vld [vmem:[#allocation3 + $0x508] sm:$0xff] }
 0x2bc   :  { %2721 = vmatprep.subr.mxu0 %v928_v23  ;;  %2420 = vmatpush3.msra.mxu1 %v1265_v62 }
 0x2bd   :  { %2722 = vmatpush3.msra.mxu0 %v928_v23  ;;  %2421 = vmatprep.subr.mxu1 %v1280_v0  ;;  %v1307_v23 = vld [vmem:[#allocation3 + $0x688] sm:$0xff] }
 0x2be   :  { %2723 = vmatprep.subr.mxu0 %v927_v24  ;;  %2422 = vmatpush3.msra.mxu1 %v1264_v2 }
 0x2bf   :  { %2724 = vmatpush3.msra.mxu0 %v927_v24  ;;  %2423 = vmatprep.subr.mxu1 %v1279_v5  ;;  %v1274_v24 = vld [vmem:[#allocation3 + $0x580] sm:$0xff] }
 0x2c0   :  { %2725 = vmatprep.subr.mxu0 %v926_v25  ;;  %2424 = vmatpush3.msra.mxu1 %v1263_v7 }
 0x2c1   :  { %2726 = vmatpush3.msra.mxu0 %v926_v25  ;;  %2425 = vmatprep.subr.mxu1 %v1278_v9  ;;  %v1291_v25 = vld [vmem:[#allocation3 + $0x608] sm:$0xff] }
 0x2c2   :  { %2728 = vmatmul.mubr.f32.vlgmr.msra.gmra.mxu0 %v963_v26  ;;  %2447 = vmatprep.subr.mxu0 %v1321_v31  ;;  %v1258_v26 = vld [vmem:[#allocation3 + $0x500] sm:$0xff] }
 0x2c3   :  { %2730 = vmatprep.mubr.f32.mxu0 %v964_v27  ;;  %2448 = vmatpush3.msra.mxu0 %v1305_v33  ;;  %v1306_v27 = vld [vmem:[#allocation3 + $0x680] sm:$0xff] }
 0x2c4   :  { %2449 = vmatprep.subr.mxu0 %v1320_v35  ;;  %2426 = vmatpush3.msra.mxu1 %v1262_v3 }
 0x2c5   :  { %2450 = vmatpush3.msra.mxu0 %v1304_v37  ;;  %2427 = vmatprep.subr.mxu1 %v1277_v12 }
 0x2c6   :  { %2731 = vmatmul.mubr.f32.gmra.mxu0 %v965_v28  ;;  %2451 = vmatprep.subr.mxu0 %v1319_v39  ;;  %v1290_v28 = vld [vmem:[#allocation3 + $0x600] sm:$0xff] }
 0x2c7   :  { %2452 = vmatpush3.msra.mxu0 %v1303_v41  ;;  %2428 = vmatpush3.msra.mxu1 %v1261_v14 }
 0x2c8   :  { %2453 = vmatprep.subr.mxu0 %v1318_v43  ;;  %2429 = vmatprep.subr.mxu1 %v1276_v16 }
 0x2c9   :  { %2454 = vmatpush3.msra.mxu0 %v1302_v45  ;;  %2430 = vmatpush3.msra.mxu1 %v1260_v18 }
 0x2ca   :  { %2455 = vmatprep.subr.mxu0 %v1317_v47  ;;  %2431 = vmatprep.subr.mxu1 %v1275_v20 }
 0x2cb   :  { %2456 = vmatpush3.msra.mxu0 %v1301_v49  ;;  %2432 = vmatpush3.msra.mxu1 %v1259_v22 }
 0x2cc   :  { %2457 = vmatprep.subr.mxu0 %v1316_v51  ;;  %2433 = vmatprep.subr.mxu1 %v1274_v24 }
 0x2cd   :  { %2458 = vmatpush3.msra.mxu0 %v1300_v53  ;;  %2434 = vmatpush3.msra.mxu1 %v1258_v26  ;;  %v2068_v53 = vld [vmem:[%s3177_s4 + $0x2] ss:$0 sm:$0xff] }
 0x2ce   :  { %2459 = vmatprep.subr.mxu0 %v1315_v55  ;;  %2733 = vmatprep.subr.mxu1 %v3141_v29 }
 0x2cf   :  { %2460 = vmatpush3.msra.mxu0 %v1299_v57 }
 0x2d0   :  { %2461 = vmatprep.subr.mxu0 %v1314_v59  ;;  %v2069_v59 = vld [vmem:[%s3178_s5 + $0x2] ss:$0 sm:$0xff] }
 0x2d1   :  { %2462 = vmatpush3.msra.mxu0 %v1298_v61 }
 0x2d2   :  { %2463 = vmatprep.subr.mxu0 %v1313_v63 }
 0x2d3   :  { %2464 = vmatpush3.msra.mxu0 %v1297_v1 }
 0x2d4   :  { %2465 = vmatprep.subr.mxu0 %v1312_v4 }
 0x2d5   :  { %2466 = vmatpush3.msra.mxu0 %v1296_v6 }
 0x2d6   :  { %2467 = vmatprep.subr.mxu0 %v1311_v8 }
 0x2d7   :  { %2468 = vmatpush3.msra.mxu0 %v1295_v10 }
 0x2d8   :  { %2469 = vmatprep.subr.mxu0 %v1310_v11 }
 0x2d9   :  { %2470 = vmatpush3.msra.mxu0 %v1294_v13 }
 0x2da   :  { %2471 = vmatprep.subr.mxu0 %v1309_v15 }
 0x2db   :  { %2472 = vmatpush3.msra.mxu0 %v1293_v17 }
 0x2dc   :  { %2473 = vmatprep.subr.mxu0 %v1308_v19 }
 0x2dd   :  { %2474 = vmatpush3.msra.mxu0 %v1292_v21 }
 0x2de   :  { %2475 = vmatprep.subr.mxu0 %v1307_v23 }
 0x2df   :  { %2476 = vmatpush3.msra.mxu0 %v1291_v25 }
 0x2e0   :  { %2477 = vmatprep.subr.mxu0 %v1306_v27  ;;  %v1336_v27 = vld [vmem:[#allocation3 + $0x770] sm:$0xff] }
 0x2e1   :  { %2478 = vmatpush3.msra.mxu0 %v1290_v28 }
 0x360   :  { %v2327_v30 = vpop.f32.mrf.mxu0  ;;  %v2371_v31 = vpop.f32.mrf.mxu1 }
 0x362   :  { %v2328_v32 = vpop.f32.mrf.mxu0  ;;  %v2372_v33 = vpop.f32.mrf.mxu1 }
 0x363   :  { %v2329_v48 = vadd.f32 %v2328_v32, %v2327_v30  ;;  %v2373_v49 = vadd.f32 %v2372_v33, %v2371_v31  ;;  %v1335_v31 = vld [vmem:[#allocation3 + $0x768] sm:$0xff]  ;;  %v1334_v33 = vld [vmem:[#allocation3 + $0x760] sm:$0xff] }
 0x364   :  { %v2330_v34 = vpop.f32.mrf.mxu0 }
 0x365   :  { %v2374_v35 = vpop.f32.mrf.mxu1  ;;  %v1118_v58 = vadd.f32 %v2373_v49, %v2329_v48  ;;  %v1325_v48 = vld [vmem:[#allocation3 + $0x718] sm:$0xff]  ;;  %v1324_v49 = vld [vmem:[#allocation3 + $0x710] sm:$0xff] }
 0x366   :  { %v2331_v36 = vpop.f32.mrf.mxu0 }
 0x367   :  { %v2375_v37 = vpop.f32.mrf.mxu1  ;;  %v2332_v44 = vadd.f32 %v2331_v36, %v2330_v34  ;;  %v1333_v36 = vld [vmem:[#allocation3 + $0x758] sm:$0xff] }
 0x368   :  { %v2376_v45 = vadd.f32 %v2375_v37, %v2374_v35  ;;  %v1332_v37 = vld [vmem:[#allocation3 + $0x750] sm:$0xff] }
 0x369   :  { %v2333_v38 = vpop.f32.mrf.mxu0 }
 0x36a   :  { %v2377_v39 = vpop.f32.mrf.mxu1  ;;  %v1123_v52 = vadd.f32 %v2376_v45, %v2332_v44  ;;  %v1329_v44 = vld [vmem:[#allocation3 + $0x738] sm:$0xff]  ;;  %v1328_v45 = vld [vmem:[#allocation3 + $0x730] sm:$0xff] }
 0x36b   :  { %v2334_v40 = vpop.f32.mrf.mxu0 }
 0x36c   :  { %v2378_v41 = vpop.f32.mrf.mxu1  ;;  %v2335_v55 = vadd.f32 %v2334_v40, %v2333_v38  ;;  %v1331_v40 = vld [vmem:[#allocation3 + $0x748] sm:$0xff] }
 0x36d   :  { %v2379_v56 = vadd.f32 %v2378_v41, %v2377_v39 }
 0x36e   :  { %v2336_v42 = vpop.f32.mrf.mxu0 }
 0x36f   :  { %v2380_v43 = vpop.f32.mrf.mxu1  ;;  %v1128_v5 = vadd.f32 %v2379_v56, %v2335_v55 }
 0x370   :  { %v2337_v46 = vpop.f32.mrf.mxu0 }
 0x371   :  { %v2381_v47 = vpop.f32.mrf.mxu1  ;;  %v2338_v50 = vadd.f32 %v2337_v46, %v2336_v42  ;;  %v1330_v42 = vld [vmem:[#allocation3 + $0x740] sm:$0xff]  ;;  %v1327_v46 = vld [vmem:[#allocation3 + $0x728] sm:$0xff] }
 0x372   :  { %v2382_v51 = vadd.f32 %v2381_v47, %v2380_v43  ;;  %v1326_v47 = vld [vmem:[#allocation3 + $0x720] sm:$0xff] }
 0x374   :  { %v1133_v63 = vadd.f32 %v2382_v51, %v2338_v50  ;;  %v1323_v50 = vld [vmem:[#allocation3 + $0x708] sm:$0xff]  ;;  %v1322_v51 = vld [vmem:[#allocation3 + $0x700] sm:$0xff] }
 0x382   :  { %v2729_v54 = vpop.f32.mrf.mxu0 }
 0x383   :  { %v1208_v57 = vadd.f32 %v2729_v54, %v1123_v52 }
 0x384   :  { %v1202_v60 = vpop.f32.mrf.mxu0 }
 0x385   :  { %v1228_v61 = vmul.f32 %v2068_v53, %v1208_v57  ;;  %v1203_v62 = vadd.f32 %v1202_v60, %v1118_v58 }
 0x386   :  { %v2732_v0 = vpop.f32.mrf.mxu0 }
 0x387   :  { %v1238_v1 = vadd.f32 %v2069_v59, %v1228_v61  ;;  %v1227_v2 = vmul.f32 %v2068_v53, %v1203_v62  ;;  %v1218_v4 = vadd.f32 %v2732_v0, %v1133_v63 }
 0x388   :  { %v1212_v6 = vpop.f32.mrf.mxu0 }
 0x389   :  { %2893 = vtanh.f32 %v1238_v1  ;;  %v1237_v7 = vadd.f32 %v2069_v59, %v1227_v2  ;;  %v1230_v8 = vmul.f32 %v2068_v53, %v1218_v4  ;;  %v1213_v9 = vadd.f32 %v1212_v6, %v1128_v5 }
 0x38b   :  { %2895 = vtanh.f32 %v1237_v7  ;;  %v1240_v10 = vadd.f32 %v2069_v59, %v1230_v8  ;;  %v1229_v3 = vmul.f32 %v2068_v53, %v1213_v9 }
 0x38d   :  { %2897 = vtanh.f32 %v1240_v10  ;;  %v1239_v11 = vadd.f32 %v2069_v59, %v1229_v3 }
 0x38f   :  { %2899 = vtanh.f32 %v1239_v11 }
 0x396   :  { %v2894_v12 = vpop.eup %2893 }
 0x397   :  { %2901 = vtanh.f32 %v2894_v12 }
 0x398   :  { %v2896_v13 = vpop.eup %2895 }
 0x399   :  { %2903 = vtanh.f32 %v2896_v13 }
 0x39a   :  { %v2898_v14 = vpop.eup %2897 }
 0x39b   :  { %2905 = vtanh.f32 %v2898_v14  ;;  %v2072_v14 = vld [vmem:[%s3177_s4 + $0x3] ss:$0 sm:$0xff] }
 0x39c   :  { %v2900_v15 = vpop.eup %2899 }
 0x39d   :  { %2907 = vtanh.f32 %v2900_v15 }
 0x3a4   :  { %v2902_v16 = vpop.eup %2901 }
 0x3a5   :  { %2909 = vtanh.f32 %v2902_v16 }
 0x3a6   :  { %v2904_v17 = vpop.eup %2903 }
 0x3a7   :  { %2911 = vtanh.f32 %v2904_v17 }
 0x3a8   :  { %v2906_v18 = vpop.eup %2905 }
 0x3a9   :  { %2913 = vtanh.f32 %v2906_v18 }
 0x3aa   :  { %v2908_v19 = vpop.eup %2907 }
 0x3ab   :  { %2915 = vtanh.f32 %v2908_v19 }
 0x3b2   :  { %v2910_v20 = vpop.eup %2909 }
 0x3b3   :  { %1254 = vst [vmem:[#allocation5 + $0x10] sm:$0xff] %v2910_v20 }
 0x3b4   :  { %v2912_v21 = vpop.eup %2911 }
 0x3b5   :  { %1253 = vst [vmem:[#allocation5 + $0x8] sm:$0xff] %v2912_v21 }
 0x3b6   :  { %v2914_v22 = vpop.eup %2913 }
 0x3b7   :  { %1256 = vst [vmem:[#allocation5 + $0x30] sm:$0xff] %v2914_v22 }
 0x3b8   :  { %v2916_v23 = vpop.eup %2915 }
 0x3b9   :  { %1255 = vst [vmem:[#allocation5 + $0x28] sm:$0xff] %v2916_v23 }
 0x3ba   :  { %v1355_v30 = vld [vmem:[#allocation5 + $0x11] sm:$0xff] }
 0x3bb   :  { %v1359_v52 = vld [vmem:[#allocation5 + $0x12] sm:$0xff] }
 0x3bc   :  { %v1346_v24 = vld [vmem:[#allocation5 + $0x7] sm:$0xff]  ;;  %v1347_v28 = vld [vmem:[#allocation5 + $0xf] sm:$0xff] }
 0x3bd   :  { %v1354_v25 = vld [vmem:[#allocation5 + $0x9] sm:$0xff]  ;;  %1426 = vmatprep.mubr.f32.mxu1 %v1346_v24 }
 0x3be   :  { %v1342_v26 = vld [vmem:[#allocation5 + $0x6] sm:$0xff]  ;;  %1511 = vmatprep.mubr.f32.mxu0 %v1354_v25  ;;  %v1343_v32 = vld [vmem:[#allocation5 + $0xe] sm:$0xff] }
 0x3bf   :  { %1427 = vmatmul.mubr.f32.vlgmr.msra.gmra.mxu1 %v1342_v26  ;;  %1512 = vmatmul.mubr.f32.vlgmr.msra.gmra.mxu0 %v2912_v21  ;;  %v1357_v39 = vld [vmem:[#allocation5 + $0x31] sm:$0xff] }
 0x3c0   :  { %2734 = vmatpush3.msra.mxu1 %v3141_v29  ;;  %1431 = vmatprep.mubr.f32.mxu1 %v1347_v28  ;;  %v1348_v34 = vld [vmem:[#allocation5 + $0x27] sm:$0xff]  ;;  %v1349_v38 = vld [vmem:[#allocation5 + $0x2f] sm:$0xff] }
 0x3c1   :  { %1516 = vmatprep.mubr.f32.mxu0 %v1355_v30  ;;  %2735 = vmatprep.subr.mxu1 %v1336_v27  ;;  %v1356_v35 = vld [vmem:[#allocation5 + $0x29] sm:$0xff]  ;;  %v1361_v54 = vld [vmem:[#allocation5 + $0x32] sm:$0xff] }
 0x3c2   :  { %2736 = vmatpush3.msra.mxu1 %v1336_v27  ;;  %v1344_v29 = vld [vmem:[#allocation5 + $0x26] sm:$0xff]  ;;  %v1345_v41 = vld [vmem:[#allocation5 + $0x2e] sm:$0xff] }
 0x3c3   :  { %2737 = vmatprep.subr.mxu1 %v1335_v31  ;;  %1432 = vmatmul.mubr.f32.gmra.mxu1 %v1343_v32  ;;  %v1358_v43 = vld [vmem:[#allocation5 + $0xa] sm:$0xff] }
 0x3c4   :  { %1517 = vmatmul.mubr.f32.gmra.mxu0 %v2910_v20  ;;  %2738 = vmatpush3.msra.mxu1 %v1335_v31  ;;  %v1360_v53 = vld [vmem:[#allocation5 + $0x2a] sm:$0xff]  ;;  %v2073_v20 = vld [vmem:[%s3178_s5 + $0x3] ss:$0 sm:$0xff] }
 0x3c5   :  { %1436 = vmatprep.mubr.f32.mxu1 %v1348_v34  ;;  %1521 = vmatprep.mubr.f32.mxu0 %v1356_v35 }
 0x3c6   :  { %2739 = vmatprep.subr.mxu1 %v1334_v33 }
 0x3c7   :  { %2740 = vmatpush3.msra.mxu1 %v1334_v33 }
 0x3c8   :  { %2741 = vmatprep.subr.mxu1 %v1333_v36  ;;  %1437 = vmatmul.mubr.f32.gmra.mxu1 %v1344_v29 }
 0x3c9   :  { %1522 = vmatmul.mubr.f32.gmra.mxu0 %v2916_v23  ;;  %2742 = vmatpush3.msra.mxu1 %v1333_v36 }
 0x3ca   :  { %1441 = vmatprep.mubr.f32.mxu1 %v1349_v38  ;;  %1526 = vmatprep.mubr.f32.mxu0 %v1357_v39 }
 0x3cb   :  { %2743 = vmatprep.subr.mxu1 %v1332_v37 }
 0x3cc   :  { %2744 = vmatpush3.msra.mxu1 %v1332_v37 }
 0x3cd   :  { %2745 = vmatprep.subr.mxu1 %v1331_v40  ;;  %1442 = vmatmul.mubr.f32.gmra.mxu1 %v1345_v41 }
 0x3ce   :  { %1527 = vmatmul.mubr.f32.gmra.mxu0 %v2914_v22  ;;  %2746 = vmatpush3.msra.mxu1 %v1331_v40 }
 0x3cf   :  { %2747 = vmatprep.subr.mxu1 %v1330_v42  ;;  %2765 = vmatprep.mubr.f32.mxu1 %v1358_v43 }
 0x3d0   :  { %2748 = vmatpush3.msra.mxu1 %v1330_v42 }
 0x3d1   :  { %2749 = vmatprep.subr.mxu1 %v1329_v44 }
 0x3d2   :  { %2750 = vmatpush3.msra.mxu1 %v1329_v44 }
 0x3d3   :  { %2751 = vmatprep.subr.mxu1 %v1328_v45 }
 0x3d4   :  { %2752 = vmatpush3.msra.mxu1 %v1328_v45 }
 0x3d5   :  { %2753 = vmatprep.subr.mxu1 %v1327_v46 }
 0x3d6   :  { %2754 = vmatpush3.msra.mxu1 %v1327_v46 }
 0x3d7   :  { %2755 = vmatprep.subr.mxu1 %v1326_v47 }
 0x3d8   :  { %2756 = vmatpush3.msra.mxu1 %v1326_v47 }
 0x3d9   :  { %2757 = vmatprep.subr.mxu1 %v1325_v48 }
 0x3da   :  { %2758 = vmatpush3.msra.mxu1 %v1325_v48 }
 0x3db   :  { %2759 = vmatprep.subr.mxu1 %v1324_v49 }
 0x3dc   :  { %2760 = vmatpush3.msra.mxu1 %v1324_v49 }
 0x3dd   :  { %2761 = vmatprep.subr.mxu1 %v1323_v50 }
 0x3de   :  { %2762 = vmatpush3.msra.mxu1 %v1323_v50 }
 0x3df   :  { %2763 = vmatprep.subr.mxu1 %v1322_v51 }
 0x3e0   :  { %2764 = vmatpush3.msra.mxu1 %v1322_v51 }
 0x3e1   :  { %2766 = vmatmul.mubr.f32.vlgmr.msra.gmra.mxu1 %v1359_v52 }
 0x3e2   :  { %2768 = vmatprep.mubr.f32.mxu1 %v1360_v53 }
 0x3e5   :  { %2769 = vmatmul.mubr.f32.gmra.mxu1 %v1361_v54 }
 0x47f   :  { %v2435_v55 = vpop.f32.mrf.mxu1  ;;  %v2479_v56 = vpop.f32.mrf.mxu0 }
 0x481   :  { %v2436_v57 = vpop.f32.mrf.mxu1  ;;  %v2480_v58 = vpop.f32.mrf.mxu0 }
 0x482   :  { %v2437_v10 = vadd.f32 %v2436_v57, %v2435_v55  ;;  %v2481_v3 = vadd.f32 %v2480_v58, %v2479_v56 }
 0x483   :  { %v2438_v59 = vpop.f32.mrf.mxu1 }
 0x484   :  { %v2482_v60 = vpop.f32.mrf.mxu0  ;;  %v1514_v19 = vadd.f32 %v2481_v3, %v2437_v10 }
 0x485   :  { %v2439_v61 = vpop.f32.mrf.mxu1 }
 0x486   :  { %v2483_v62 = vpop.f32.mrf.mxu0  ;;  %v2440_v6 = vadd.f32 %v2439_v61, %v2438_v59 }
 0x487   :  { %v2484_v7 = vadd.f32 %v2483_v62, %v2482_v60 }
 0x488   :  { %v2441_v63 = vpop.f32.mrf.mxu1 }
 0x489   :  { %v2485_v0 = vpop.f32.mrf.mxu0  ;;  %v1519_v13 = vadd.f32 %v2484_v7, %v2440_v6 }
 0x48a   :  { %v2442_v1 = vpop.f32.mrf.mxu1 }
 0x48b   :  { %v2486_v2 = vpop.f32.mrf.mxu0  ;;  %v2443_v16 = vadd.f32 %v2442_v1, %v2441_v63 }
 0x48c   :  { %v2487_v17 = vadd.f32 %v2486_v2, %v2485_v0 }
 0x48d   :  { %v2444_v4 = vpop.f32.mrf.mxu1 }
 0x48e   :  { %v2488_v5 = vpop.f32.mrf.mxu0  ;;  %v1524_v30 = vadd.f32 %v2487_v17, %v2443_v16 }
 0x48f   :  { %v2445_v8 = vpop.f32.mrf.mxu1 }
 0x490   :  { %v2489_v9 = vpop.f32.mrf.mxu0  ;;  %v2446_v11 = vadd.f32 %v2445_v8, %v2444_v4 }
 0x491   :  { %v2490_v12 = vadd.f32 %v2489_v9, %v2488_v5 }
 0x493   :  { %v1529_v24 = vadd.f32 %v2490_v12, %v2446_v11 }
 0x4a1   :  { %v2767_v15 = vpop.f32.mrf.mxu1 }
 0x4a2   :  { %v1604_v18 = vadd.f32 %v2767_v15, %v1519_v13 }
 0x4a3   :  { %v1598_v21 = vpop.f32.mrf.mxu1 }
 0x4a4   :  { %v1624_v22 = vmul.f32 %v2072_v14, %v1604_v18  ;;  %v1599_v23 = vadd.f32 %v1598_v21, %v1514_v19 }
 0x4a5   :  { %v2770_v25 = vpop.f32.mrf.mxu1 }
 0x4a6   :  { %v1634_v26 = vadd.f32 %v2073_v20, %v1624_v22  ;;  %v1623_v27 = vmul.f32 %v2072_v14, %v1599_v23  ;;  %v1614_v28 = vadd.f32 %v2770_v25, %v1529_v24 }
 0x4a7   :  { %v1608_v31 = vpop.f32.mrf.mxu1 }
 0x4a8   :  { %2917 = vtanh.f32 %v1634_v26  ;;  %v1633_v32 = vadd.f32 %v2073_v20, %v1623_v27  ;;  %v1626_v33 = vmul.f32 %v2072_v14, %v1614_v28  ;;  %v1609_v34 = vadd.f32 %v1608_v31, %v1524_v30 }
 0x4aa   :  { %2919 = vtanh.f32 %v1633_v32  ;;  %v1636_v35 = vadd.f32 %v2073_v20, %v1626_v33  ;;  %v1625_v36 = vmul.f32 %v2072_v14, %v1609_v34 }
 0x4ac   :  { %2921 = vtanh.f32 %v1636_v35  ;;  %v1635_v29 = vadd.f32 %v2073_v20, %v1625_v36 }
 0x4ae   :  { %2923 = vtanh.f32 %v1635_v29 }
 0x4b5   :  { %v2918_v37 = vpop.eup %2917 }
 0x4b6   :  { %2925 = vtanh.f32 %v2918_v37 }
 0x4b7   :  { %v2920_v38 = vpop.eup %2919 }
 0x4b8   :  { %2927 = vtanh.f32 %v2920_v38 }
 0x4b9   :  { %v2922_v39 = vpop.eup %2921 }
 0x4ba   :  { %2929 = vtanh.f32 %v2922_v39 }
 0x4bb   :  { %v2924_v40 = vpop.eup %2923 }
 0x4bc   :  { %2931 = vtanh.f32 %v2924_v40 }
 0x4c3   :  { %v2926_v41 = vpop.eup %2925 }
 0x4c4   :  { %2933 = vtanh.f32 %v2926_v41 }
 0x4c5   :  { %v2928_v42 = vpop.eup %2927 }
 0x4c6   :  { %2935 = vtanh.f32 %v2928_v42 }
 0x4c7   :  { %v2930_v43 = vpop.eup %2929 }
 0x4c8   :  { %2937 = vtanh.f32 %v2930_v43 }
 0x4c9   :  { %v2932_v44 = vpop.eup %2931 }
 0x4ca   :  { %2939 = vtanh.f32 %v2932_v44 }
 0x4d1   :  { %v2934_v45 = vpop.eup %2933 }
 0x4d2   :  { %1650 = vst [vmem:[#allocation6 + $0x10] sm:$0xff] %v2934_v45 }
 0x4d3   :  { %v2936_v46 = vpop.eup %2935 }
 0x4d4   :  { %1649 = vst [vmem:[#allocation6 + $0x8] sm:$0xff] %v2936_v46 }
 0x4d5   :  { %v2938_v47 = vpop.eup %2937 }
 0x4d6   :  { %1652 = vst [vmem:[#allocation6 + $0x30] sm:$0xff] %v2938_v47 }
 0x4d7   :  { %v2940_v48 = vpop.eup %2939 }
 0x4d8   :  { %1651 = vst [vmem:[#allocation6 + $0x28] sm:$0xff] %v2940_v48 }
 0x4d9   :  { %3005 = dma.done.wait [#allocation7 + $0x2], 10240 }
 0x4da   :  { %3006 = vsyncadd [#allocation7 + $0x2], 4294957056  ;;  %v1686_v49 = vld [vmem:[#allocation4 + $0xf8] sm:$0xff]  ;;  %v1685_v53 = vld [vmem:[#allocation4 + $0xf0] sm:$0xff] }
 0x4db   :  { %v1718_v50 = vld [vmem:[#allocation4 + $0x1f8] sm:$0xff]  ;;  %2511 = vmatprep.subr.mxu0 %v1686_v49  ;;  %v1717_v54 = vld [vmem:[#allocation4 + $0x1f0] sm:$0xff]  ;;  %v1684_v57 = vld [vmem:[#allocation4 + $0xe8] sm:$0xff] }
 0x4dc   :  { %v1670_v51 = vld [vmem:[#allocation4 + $0x78] sm:$0xff]  ;;  %2555 = vmatprep.subr.mxu1 %v1718_v50  ;;  %v1669_v55 = vld [vmem:[#allocation4 + $0x70] sm:$0xff]  ;;  %v1716_v58 = vld [vmem:[#allocation4 + $0x1e8] sm:$0xff] }
 0x4dd   :  { %v1702_v52 = vld [vmem:[#allocation4 + $0x178] sm:$0xff]  ;;  %2512 = vmatpush3.msra.mxu0 %v1670_v51  ;;  %v1701_v56 = vld [vmem:[#allocation4 + $0x170] sm:$0xff]  ;;  %v1668_v59 = vld [vmem:[#allocation4 + $0x68] sm:$0xff] }
 0x4de   :  { %2556 = vmatpush3.msra.mxu1 %v1702_v52  ;;  %2513 = vmatprep.subr.mxu0 %v1685_v53  ;;  %v1700_v60 = vld [vmem:[#allocation4 + $0x168] sm:$0xff]  ;;  %v1683_v61 = vld [vmem:[#allocation4 + $0xe0] sm:$0xff]  ;;  %v1682_v1 = vld [vmem:[#allocation4 + $0xd8] sm:$0xff] }
 0x4df   :  { %2557 = vmatprep.subr.mxu1 %v1717_v54  ;;  %2514 = vmatpush3.msra.mxu0 %v1669_v55  ;;  %v1715_v62 = vld [vmem:[#allocation4 + $0x1e0] sm:$0xff]  ;;  %v1714_v2 = vld [vmem:[#allocation4 + $0x1d8] sm:$0xff]  ;;  %v1681_v6 = vld [vmem:[#allocation4 + $0xd0] sm:$0xff] }
 0x4e0   :  { %2558 = vmatpush3.msra.mxu1 %v1701_v56  ;;  %2515 = vmatprep.subr.mxu0 %v1684_v57  ;;  %v1667_v63 = vld [vmem:[#allocation4 + $0x60] sm:$0xff]  ;;  %v1666_v4 = vld [vmem:[#allocation4 + $0x58] sm:$0xff]  ;;  %v1713_v7 = vld [vmem:[#allocation4 + $0x1d0] sm:$0xff] }
 0x4e1   :  { %2559 = vmatprep.subr.mxu1 %v1716_v58  ;;  %v1699_v0 = vld [vmem:[#allocation4 + $0x160] sm:$0xff]  ;;  %2516 = vmatpush3.msra.mxu0 %v1668_v59  ;;  %v1698_v5 = vld [vmem:[#allocation4 + $0x158] sm:$0xff]  ;;  %v1665_v8 = vld [vmem:[#allocation4 + $0x50] sm:$0xff] }
 0x4e2   :  { %2560 = vmatpush3.msra.mxu1 %v1700_v60  ;;  %2517 = vmatprep.subr.mxu0 %v1683_v61  ;;  %v1697_v9 = vld [vmem:[#allocation4 + $0x150] sm:$0xff]  ;;  %v1680_v10 = vld [vmem:[#allocation4 + $0xc8] sm:$0xff]  ;;  %v1679_v13 = vld [vmem:[#allocation4 + $0xc0] sm:$0xff] }
 0x4e3   :  { %2561 = vmatprep.subr.mxu1 %v1715_v62  ;;  %2518 = vmatpush3.msra.mxu0 %v1667_v63  ;;  %v1712_v3 = vld [vmem:[#allocation4 + $0x1c8] sm:$0xff]  ;;  %v1711_v14 = vld [vmem:[#allocation4 + $0x1c0] sm:$0xff]  ;;  %v1678_v17 = vld [vmem:[#allocation4 + $0xb8] sm:$0xff] }
 0x4e4   :  { %2562 = vmatpush3.msra.mxu1 %v1699_v0  ;;  %2519 = vmatprep.subr.mxu0 %v1682_v1  ;;  %v1664_v11 = vld [vmem:[#allocation4 + $0x48] sm:$0xff]  ;;  %v1663_v15 = vld [vmem:[#allocation4 + $0x40] sm:$0xff]  ;;  %v1710_v18 = vld [vmem:[#allocation4 + $0x1b8] sm:$0xff] }
 0x4e5   :  { %2563 = vmatprep.subr.mxu1 %v1714_v2  ;;  %2520 = vmatpush3.msra.mxu0 %v1666_v4  ;;  %v1696_v12 = vld [vmem:[#allocation4 + $0x148] sm:$0xff]  ;;  %v1695_v16 = vld [vmem:[#allocation4 + $0x140] sm:$0xff]  ;;  %v1662_v19 = vld [vmem:[#allocation4 + $0x38] sm:$0xff] }
 0x4e6   :  { %2564 = vmatpush3.msra.mxu1 %v1698_v5  ;;  %2521 = vmatprep.subr.mxu0 %v1681_v6  ;;  %v1694_v20 = vld [vmem:[#allocation4 + $0x138] sm:$0xff]  ;;  %v1677_v21 = vld [vmem:[#allocation4 + $0xb0] sm:$0xff]  ;;  %v1676_v25 = vld [vmem:[#allocation4 + $0xa8] sm:$0xff] }
 0x4e7   :  { %2565 = vmatprep.subr.mxu1 %v1713_v7  ;;  %2522 = vmatpush3.msra.mxu0 %v1665_v8  ;;  %v1709_v22 = vld [vmem:[#allocation4 + $0x1b0] sm:$0xff]  ;;  %v1708_v26 = vld [vmem:[#allocation4 + $0x1a8] sm:$0xff]  ;;  %v1675_v30 = vld [vmem:[#allocation4 + $0xa0] sm:$0xff] }
 0x4e8   :  { %2566 = vmatpush3.msra.mxu1 %v1697_v9  ;;  %2523 = vmatprep.subr.mxu0 %v1680_v10  ;;  %v1661_v23 = vld [vmem:[#allocation4 + $0x30] sm:$0xff]  ;;  %v1660_v27 = vld [vmem:[#allocation4 + $0x28] sm:$0xff]  ;;  %v1707_v31 = vld [vmem:[#allocation4 + $0x1a0] sm:$0xff] }
 0x4e9   :  { %2567 = vmatprep.subr.mxu1 %v1712_v3  ;;  %2524 = vmatpush3.msra.mxu0 %v1664_v11  ;;  %v1693_v24 = vld [vmem:[#allocation4 + $0x130] sm:$0xff]  ;;  %v1692_v28 = vld [vmem:[#allocation4 + $0x128] sm:$0xff]  ;;  %v1659_v32 = vld [vmem:[#allocation4 + $0x20] sm:$0xff] }
 0x4ea   :  { %2568 = vmatpush3.msra.mxu1 %v1696_v12  ;;  %2525 = vmatprep.subr.mxu0 %v1679_v13  ;;  %v1691_v33 = vld [vmem:[#allocation4 + $0x120] sm:$0xff]  ;;  %v1674_v34 = vld [vmem:[#allocation4 + $0x98] sm:$0xff]  ;;  %v1673_v37 = vld [vmem:[#allocation4 + $0x90] sm:$0xff] }
 0x4eb   :  { %2569 = vmatprep.subr.mxu1 %v1711_v14  ;;  %2526 = vmatpush3.msra.mxu0 %v1663_v15  ;;  %v1706_v35 = vld [vmem:[#allocation4 + $0x198] sm:$0xff]  ;;  %v1705_v38 = vld [vmem:[#allocation4 + $0x190] sm:$0xff]  ;;  %v1672_v41 = vld [vmem:[#allocation4 + $0x88] sm:$0xff] }
 0x4ec   :  { %2570 = vmatpush3.msra.mxu1 %v1695_v16  ;;  %2527 = vmatprep.subr.mxu0 %v1678_v17  ;;  %v1658_v36 = vld [vmem:[#allocation4 + $0x18] sm:$0xff]  ;;  %v1657_v39 = vld [vmem:[#allocation4 + $0x10] sm:$0xff]  ;;  %v1704_v42 = vld [vmem:[#allocation4 + $0x188] sm:$0xff] }
 0x4ed   :  { %2571 = vmatprep.subr.mxu1 %v1710_v18  ;;  %2528 = vmatpush3.msra.mxu0 %v1662_v19  ;;  %v1690_v29 = vld [vmem:[#allocation4 + $0x118] sm:$0xff]  ;;  %v1689_v40 = vld [vmem:[#allocation4 + $0x110] sm:$0xff]  ;;  %v1656_v43 = vld [vmem:[#allocation4 + $0x8] sm:$0xff] }
 0x4ee   :  { %2572 = vmatpush3.msra.mxu1 %v1694_v20  ;;  %2529 = vmatprep.subr.mxu0 %v1677_v21  ;;  %v1688_v44 = vld [vmem:[#allocation4 + $0x108] sm:$0xff]  ;;  %v1671_v45 = vld [vmem:[#allocation4 + $0x80] sm:$0xff]  ;;  %v1734_v53 = vld [vmem:[#allocation4 + $0x278] sm:$0xff] }
 0x4ef   :  { %2573 = vmatprep.subr.mxu1 %v1709_v22  ;;  %2530 = vmatpush3.msra.mxu0 %v1661_v23  ;;  %v1703_v46 = vld [vmem:[#allocation4 + $0x180] sm:$0xff]  ;;  %v1749_v50 = vld [vmem:[#allocation6 + $0x9] sm:$0xff]  ;;  %v1730_v57 = vld [vmem:[#allocation4 + $0x258] sm:$0xff] }
 0x4f0   :  { %2574 = vmatpush3.msra.mxu1 %v1693_v24  ;;  %2531 = vmatprep.subr.mxu0 %v1676_v25  ;;  %v1655_v47 = vld [vmem:[#allocation4] sm:$0xff]  ;;  %v1745_v52 = vld [vmem:[#allocation6 + $0x8] sm:$0xff]  ;;  %v1733_v54 = vld [vmem:[#allocation4 + $0x270] sm:$0xff] }
 0x4f1   :  { %2575 = vmatprep.subr.mxu1 %v1708_v26  ;;  %2532 = vmatpush3.msra.mxu0 %v1660_v27  ;;  %v1741_v48 = vld [vmem:[#allocation6 + $0x7] sm:$0xff]  ;;  %v1729_v58 = vld [vmem:[#allocation4 + $0x250] sm:$0xff]  ;;  %v1726_v61 = vld [vmem:[#allocation4 + $0x238] sm:$0xff] }
 0x4f2   :  { %2576 = vmatpush3.msra.mxu1 %v1692_v28  ;;  %2533 = vmatprep.subr.mxu0 %v1675_v30  ;;  %v1687_v49 = vld [vmem:[#allocation4 + $0x100] sm:$0xff]  ;;  %v1732_v55 = vld [vmem:[#allocation4 + $0x268] sm:$0xff]  ;;  %v1750_v63 = vld [vmem:[#allocation6 + $0x11] sm:$0xff] }
 0x4f3   :  { %2577 = vmatprep.subr.mxu1 %v1707_v31  ;;  %2534 = vmatpush3.msra.mxu0 %v1659_v32  ;;  %v1737_v51 = vld [vmem:[#allocation6 + $0x6] sm:$0xff]  ;;  %v1742_v62 = vld [vmem:[#allocation6 + $0xf] sm:$0xff]  ;;  %v1722_v10 = vld [vmem:[#allocation4 + $0x218] sm:$0xff] }
 0x4f4   :  { %2578 = vmatpush3.msra.mxu1 %v1691_v33  ;;  %2535 = vmatprep.subr.mxu0 %v1674_v34  ;;  %v1731_v56 = vld [vmem:[#allocation4 + $0x260] sm:$0xff]  ;;  %v1728_v59 = vld [vmem:[#allocation4 + $0x248] sm:$0xff]  ;;  %v1746_v1 = vld [vmem:[#allocation6 + $0x10] sm:$0xff] }
 0x4f5   :  { %2579 = vmatprep.subr.mxu1 %v1706_v35  ;;  %2536 = vmatpush3.msra.mxu0 %v1658_v36  ;;  %v1727_v60 = vld [vmem:[#allocation4 + $0x240] sm:$0xff]  ;;  %v1738_v0 = vld [vmem:[#allocation6 + $0xe] sm:$0xff] }
 0x4f6   :  { %2580 = vmatpush3.msra.mxu1 %v1690_v29  ;;  %2537 = vmatprep.subr.mxu0 %v1673_v37  ;;  %v1725_v2 = vld [vmem:[#allocation4 + $0x230] sm:$0xff]  ;;  %v1724_v4 = vld [vmem:[#allocation4 + $0x228] sm:$0xff]  ;;  %v1723_v9 = vld [vmem:[#allocation4 + $0x220] sm:$0xff] }
 0x4f7   :  { %2581 = vmatprep.subr.mxu1 %v1705_v38  ;;  %2538 = vmatpush3.msra.mxu0 %v1657_v39  ;;  %v1743_v5 = vld [vmem:[#allocation6 + $0x27] sm:$0xff]  ;;  %v1744_v3 = vld [vmem:[#allocation6 + $0x2f] sm:$0xff] }
 0x4f8   :  { %2582 = vmatpush3.msra.mxu1 %v1689_v40  ;;  %2539 = vmatprep.subr.mxu0 %v1672_v41  ;;  %v1751_v6 = vld [vmem:[#allocation6 + $0x29] sm:$0xff]  ;;  %v1752_v11 = vld [vmem:[#allocation6 + $0x31] sm:$0xff]  ;;  %v1719_v16 = vld [vmem:[#allocation4 + $0x200] sm:$0xff] }
 0x4f9   :  { %2583 = vmatprep.subr.mxu1 %v1704_v42  ;;  %2540 = vmatpush3.msra.mxu0 %v1656_v43  ;;  %v1739_v7 = vld [vmem:[#allocation6 + $0x26] sm:$0xff]  ;;  %v1740_v12 = vld [vmem:[#allocation6 + $0x2e] sm:$0xff] }
 0x4fa   :  { %2584 = vmatpush3.msra.mxu1 %v1688_v44  ;;  %2541 = vmatprep.subr.mxu0 %v1671_v45  ;;  %v1747_v8 = vld [vmem:[#allocation6 + $0x28] sm:$0xff]  ;;  %v1748_v13 = vld [vmem:[#allocation6 + $0x30] sm:$0xff] }
 0x4fb   :  { %2585 = vmatprep.subr.mxu1 %v1703_v46  ;;  %2542 = vmatpush3.msra.mxu0 %v1655_v47  ;;  %v1721_v14 = vld [vmem:[#allocation4 + $0x210] sm:$0xff]  ;;  %v1720_v15 = vld [vmem:[#allocation4 + $0x208] sm:$0xff]  ;;  %v2074_v47 = vld [vmem:[%s3179_s6] ss:$0 sm:$0xff] }
 0x4fc   :  { %1821 = vmatprep.mubr.f32.mxu0 %v1741_v48  ;;  %2586 = vmatpush3.msra.mxu1 %v1687_v49  ;;  %v1753_v17 = vld [vmem:[#allocation6 + $0xa] sm:$0xff]  ;;  %v1754_v19 = vld [vmem:[#allocation6 + $0x12] sm:$0xff] }
 0x4fd   :  { %1906 = vmatprep.mubr.f32.mxu1 %v1749_v50  ;;  %1822 = vmatmul.mubr.f32.vlgmr.msra.gmra.mxu0 %v1737_v51  ;;  %v1755_v18 = vld [vmem:[#allocation6 + $0x2a] sm:$0xff]  ;;  %v1756_v20 = vld [vmem:[#allocation6 + $0x32] sm:$0xff] }
 0x4fe   :  { %1907 = vmatmul.mubr.f32.vlgmr.msra.gmra.mxu1 %v1745_v52  ;;  %2771 = vmatprep.subr.mxu0 %v1734_v53 }
 0x4ff   :  { %2809 = vmatprep.subr.mxu1 %v1734_v53  ;;  %2772 = vmatpush3.msra.mxu0 %v1734_v53 }
 0x500   :  { %2825 = vmatpush3.msra.mxu1 %v1734_v53  ;;  %2773 = vmatprep.subr.mxu0 %v1733_v54 }
 0x501   :  { %2810 = vmatprep.subr.mxu1 %v1733_v54  ;;  %2774 = vmatpush3.msra.mxu0 %v1733_v54 }
 0x502   :  { %2826 = vmatpush3.msra.mxu1 %v1733_v54  ;;  %2775 = vmatprep.subr.mxu0 %v1732_v55  ;;  %v2075_v54 = vld [vmem:[%s3180_s7] ss:$0 sm:$0xff] }
 0x503   :  { %2811 = vmatprep.subr.mxu1 %v1732_v55  ;;  %2776 = vmatpush3.msra.mxu0 %v1732_v55 }
 0x504   :  { %2827 = vmatpush3.msra.mxu1 %v1732_v55  ;;  %2777 = vmatprep.subr.mxu0 %v1731_v56 }
 0x505   :  { %2812 = vmatprep.subr.mxu1 %v1731_v56  ;;  %2778 = vmatpush3.msra.mxu0 %v1731_v56 }
 0x506   :  { %2828 = vmatpush3.msra.mxu1 %v1731_v56  ;;  %2779 = vmatprep.subr.mxu0 %v1730_v57 }
 0x507   :  { %2813 = vmatprep.subr.mxu1 %v1730_v57  ;;  %2780 = vmatpush3.msra.mxu0 %v1730_v57 }
 0x508   :  { %2829 = vmatpush3.msra.mxu1 %v1730_v57  ;;  %2781 = vmatprep.subr.mxu0 %v1729_v58 }
 0x509   :  { %2814 = vmatprep.subr.mxu1 %v1729_v58  ;;  %2782 = vmatpush3.msra.mxu0 %v1729_v58 }
 0x50a   :  { %2830 = vmatpush3.msra.mxu1 %v1729_v58  ;;  %2783 = vmatprep.subr.mxu0 %v1728_v59 }
 0x50b   :  { %2815 = vmatprep.subr.mxu1 %v1728_v59  ;;  %2784 = vmatpush3.msra.mxu0 %v1728_v59 }
 0x50c   :  { %2831 = vmatpush3.msra.mxu1 %v1728_v59  ;;  %2785 = vmatprep.subr.mxu0 %v1727_v60 }
 0x50d   :  { %2816 = vmatprep.subr.mxu1 %v1727_v60  ;;  %2786 = vmatpush3.msra.mxu0 %v1727_v60 }
 0x50e   :  { %2832 = vmatpush3.msra.mxu1 %v1727_v60  ;;  %2787 = vmatprep.subr.mxu0 %v1726_v61 }
 0x50f   :  { %2817 = vmatprep.subr.mxu1 %v1726_v61  ;;  %1826 = vmatprep.mubr.f32.mxu0 %v1742_v62 }
 0x510   :  { %1911 = vmatprep.mubr.f32.mxu1 %v1750_v63  ;;  %2788 = vmatpush3.msra.mxu0 %v1726_v61 }
 0x511   :  { %2833 = vmatpush3.msra.mxu1 %v1726_v61  ;;  %1827 = vmatmul.mubr.f32.gmra.mxu0 %v1738_v0 }
 0x512   :  { %1912 = vmatmul.mubr.f32.gmra.mxu1 %v1746_v1  ;;  %2789 = vmatprep.subr.mxu0 %v1725_v2 }
 0x513   :  { %2818 = vmatprep.subr.mxu1 %v1725_v2  ;;  %2790 = vmatpush3.msra.mxu0 %v1725_v2 }
 0x514   :  { %2834 = vmatpush3.msra.mxu1 %v1725_v2  ;;  %2791 = vmatprep.subr.mxu0 %v1724_v4 }
 0x515   :  { %2819 = vmatprep.subr.mxu1 %v1724_v4  ;;  %1831 = vmatprep.mubr.f32.mxu0 %v1743_v5 }
 0x516   :  { %1916 = vmatprep.mubr.f32.mxu1 %v1751_v6  ;;  %2792 = vmatpush3.msra.mxu0 %v1724_v4 }
 0x517   :  { %2835 = vmatpush3.msra.mxu1 %v1724_v4  ;;  %1832 = vmatmul.mubr.f32.gmra.mxu0 %v1739_v7 }
 0x518   :  { %1917 = vmatmul.mubr.f32.gmra.mxu1 %v1747_v8  ;;  %2793 = vmatprep.subr.mxu0 %v1723_v9 }
 0x519   :  { %2820 = vmatprep.subr.mxu1 %v1723_v9  ;;  %2794 = vmatpush3.msra.mxu0 %v1723_v9 }
 0x51a   :  { %2836 = vmatpush3.msra.mxu1 %v1723_v9  ;;  %2795 = vmatprep.subr.mxu0 %v1722_v10 }
 0x51b   :  { %2821 = vmatprep.subr.mxu1 %v1722_v10  ;;  %1836 = vmatprep.mubr.f32.mxu0 %v1744_v3 }
 0x51c   :  { %1921 = vmatprep.mubr.f32.mxu1 %v1752_v11  ;;  %2796 = vmatpush3.msra.mxu0 %v1722_v10 }
 0x51d   :  { %2837 = vmatpush3.msra.mxu1 %v1722_v10  ;;  %1837 = vmatmul.mubr.f32.gmra.mxu0 %v1740_v12 }
 0x51e   :  { %1922 = vmatmul.mubr.f32.gmra.mxu1 %v1748_v13  ;;  %2797 = vmatprep.subr.mxu0 %v1721_v14 }
 0x51f   :  { %2822 = vmatprep.subr.mxu1 %v1721_v14  ;;  %2798 = vmatpush3.msra.mxu0 %v1721_v14 }
 0x520   :  { %2838 = vmatpush3.msra.mxu1 %v1721_v14  ;;  %2799 = vmatprep.subr.mxu0 %v1720_v15 }
 0x521   :  { %2823 = vmatprep.subr.mxu1 %v1720_v15  ;;  %2800 = vmatpush3.msra.mxu0 %v1720_v15 }
 0x522   :  { %2839 = vmatpush3.msra.mxu1 %v1720_v15  ;;  %2801 = vmatprep.subr.mxu0 %v1719_v16 }
 0x523   :  { %2824 = vmatprep.subr.mxu1 %v1719_v16  ;;  %2802 = vmatpush3.msra.mxu0 %v1719_v16 }
 0x524   :  { %2840 = vmatpush3.msra.mxu1 %v1719_v16  ;;  %2803 = vmatprep.mubr.f32.mxu0 %v1753_v17 }
 0x525   :  { %2806 = vmatprep.mubr.f32.mxu1 %v1755_v18  ;;  %2804 = vmatmul.mubr.f32.vlgmr.msra.gmra.mxu0 %v1754_v19 }
 0x526   :  { %2807 = vmatmul.mubr.f32.vlgmr.msra.gmra.mxu1 %v1756_v20 }
 0x5bd   :  { %v2543_v21 = vpop.f32.mrf.mxu0 }
 0x5be   :  { %v2587_v22 = vpop.f32.mrf.mxu1 }
 0x5bf   :  { %v2544_v23 = vpop.f32.mrf.mxu0 }
 0x5c0   :  { %v2588_v24 = vpop.f32.mrf.mxu1  ;;  %v2545_v41 = vadd.f32 %v2544_v23, %v2543_v21 }
 0x5c1   :  { %v2589_v42 = vadd.f32 %v2588_v24, %v2587_v22 }
 0x5c3   :  { %v1909_v52 = vadd.f32 %v2589_v42, %v2545_v41 }
 0x5d1   :  { %v2546_v25 = vpop.f32.mrf.mxu0 }
 0x5d2   :  { %v2590_v26 = vpop.f32.mrf.mxu1 }
 0x5d3   :  { %v2547_v27 = vpop.f32.mrf.mxu0 }
 0x5d4   :  { %v2591_v28 = vpop.f32.mrf.mxu1  ;;  %v2548_v37 = vadd.f32 %v2547_v27, %v2546_v25 }
 0x5d5   :  { %v2592_v38 = vadd.f32 %v2591_v28, %v2590_v26 }
 0x5d7   :  { %v2549_v30 = vpop.f32.mrf.mxu0  ;;  %v1914_v46 = vadd.f32 %v2592_v38, %v2548_v37 }
 0x5d8   :  { %v2593_v31 = vpop.f32.mrf.mxu1 }
 0x5d9   :  { %v2550_v32 = vpop.f32.mrf.mxu0 }
 0x5da   :  { %v2594_v33 = vpop.f32.mrf.mxu1  ;;  %v2551_v43 = vadd.f32 %v2550_v32, %v2549_v30 }
 0x5db   :  { %v2595_v44 = vadd.f32 %v2594_v33, %v2593_v31 }
 0x5dd   :  { %v2552_v34 = vpop.f32.mrf.mxu0  ;;  %v1919_v53 = vadd.f32 %v2595_v44, %v2551_v43 }
 0x5de   :  { %v2596_v35 = vpop.f32.mrf.mxu1 }
 0x5df   :  { %v2553_v36 = vpop.f32.mrf.mxu0 }
 0x5e0   :  { %v2597_v29 = vpop.f32.mrf.mxu1  ;;  %v2554_v39 = vadd.f32 %v2553_v36, %v2552_v34 }
 0x5e1   :  { %v2598_v40 = vadd.f32 %v2597_v29, %v2596_v35 }
 0x5e3   :  { %v1924_v45 = vadd.f32 %v2598_v40, %v2554_v39 }
 0x5e5   :  { %v2805_v48 = vpop.f32.mrf.mxu0 }
 0x5e6   :  { %v2808_v49 = vpop.f32.mrf.mxu1  ;;  %v1999_v50 = vadd.f32 %v2805_v48, %v1914_v46 }
 0x5e7   :  { %v2009_v51 = vadd.f32 %v2808_v49, %v1924_v45  ;;  %v1993_v55 = vpop.f32.mrf.mxu0 }
 0x5e8   :  { %v2003_v56 = vpop.f32.mrf.mxu1  ;;  %v2019_v57 = vmul.f32 %v2074_v47, %v1999_v50  ;;  %v1994_v59 = vadd.f32 %v1993_v55, %v1909_v52 }
 0x5e9   :  { %v2021_v58 = vmul.f32 %v2074_v47, %v2009_v51  ;;  %v2004_v60 = vadd.f32 %v2003_v56, %v1919_v53 }
 0x5ea   :  { %v2029_v61 = vadd.f32 %v2075_v54, %v2019_v57  ;;  %v2018_v63 = vmul.f32 %v2074_v47, %v1994_v59 }
 0x5eb   :  { %v2031_v62 = vadd.f32 %v2075_v54, %v2021_v58  ;;  %v2020_v0 = vmul.f32 %v2074_v47, %v2004_v60 }
 0x5ec   :  { %2033 = vst [vmem:[%s3181_s8 + $0x8] sm:$0xff] %v2029_v61  ;;  %v2028_v1 = vadd.f32 %v2075_v54, %v2018_v63 }
 0x5ed   :  { %2035 = vst [vmem:[%s3181_s8 + $0x18] sm:$0xff] %v2031_v62  ;;  %v2030_v2 = vadd.f32 %v2075_v54, %v2020_v0 }
 0x5ee   :  { %2032 = vst [vmem:[%s3181_s8] sm:$0xff] %v2028_v1 }
 0x5ef   :  { %2034 = vst [vmem:[%s3181_s8 + $0x10] sm:$0xff] %v2030_v2 }
 0x5f0   :  { %2040 = vsyncmov [#allocation7] }
 0x5f3   :  { %s2041_s30 = vpop.sfrf %2040 }
 0x5f4   :  { %p2076_p1 = scmp.ne.s32.totalorder %s2041_s30, 0 }
 0x5f6   :  { %2045 = shalt.err (%p2076_p1)  }
 0x5f7   :  { %2047 = vsyncmov [#allocation7 + $0x1] }
 0x5fa   :  { %s2048_s9 = vpop.sfrf %2047 }
 0x5fb   :  { %p2077_p2 = scmp.ne.s32.totalorder %s2048_s9, 0 }
 0x5fd   :  { %2052 = shalt.err (%p2077_p2)  }
 0x5fe   :  { %2054 = vsyncmov [#allocation7 + $0x2] }
 0x601   :  { %s2055_s0 = vpop.sfrf %2054 }
 0x602   :  { %p2078_p3 = scmp.ne.s32.totalorder %s2055_s0, 0 }
 0x604   :  { %2059 = shalt.err (%p2078_p3)  }

</bundles_post_ra>
